<compile_context>
chip_gen: v5e
topology: v5e:2x2
jax: 0.10.0
libtpu: 0.0.40
codegen_flags: <defaults>
</compile_context>

<pallas_src>
import jax
import jax.numpy as jnp
from jax.experimental import pallas as pl
from jax.experimental.pallas import tpu as pltpu

INPUT_SIZE = 28
HIDDEN = 64
NUM_CLASSES = 10


def lstm_fused_kernel(x_ref, wih_ref, whh_ref, b_ref, wout_ref, bout_ref,
                      o_ref, gates_scr):
    """Fused LSTM recurrence + output projection.

    x_ref:     (B, T, I)     batch-first input
    wih_ref:   (I, 4H)       weight_ih_l0.T
    whh_ref:   (H, 4H)       weight_hh_l0.T
    b_ref:     (1, 4H)       bias_ih_l0 + bias_hh_l0
    wout_ref:  (H, C)        out.weight.T
    bout_ref:  (1, C)        out.bias
    o_ref:     (B-1, T, C)   out = r_out[:-1] @ out.weight.T + out.bias
    gates_scr: (T, B, 4H)    VMEM scratch, time-major staged input projections
    """
    B, T, I = x_ref.shape
    H = whh_ref.shape[0]

    # ---- Prologue: input projection hoisted out of the serial recurrence ---
    # One MXU matmul with M = B*T rows plus a single bias broadcast.  The
    # (B,T,I)->(B*T,I) reshape is layout-preserving (T == 8 == sublane tile).
    x_flat = x_ref[...].reshape(B * T, I)
    gx = jnp.dot(x_flat, wih_ref[...],
                 preferred_element_type=jnp.float32) + b_ref[...]   # (B*T, 4H)
    gx = gx.reshape(B, T, 4 * H)                                    # (B, T, 4H)

    # Stage per-step gate slabs time-major in VMEM.  The batch->time sublane
    # shuffle happens once, up front, and the recurrence below reads each
    # gates_scr[t] as a tile-aligned (B, 4H) slab (plain vreg loads, nothing
    # on the serial chain and no vregs held across the unrolled loop).
    for t in range(T):
        gates_scr[t] = gx[:, t, :]

    # ---- Serial recurrence: h/c live in vregs, loop fully unrolled (T=8) ---
    wout = wout_ref[...]                                            # (H, C)
    bout = bout_ref[...]                                            # (1, C)
    h = jnp.zeros((B, H), jnp.float32)
    c = jnp.zeros((B, H), jnp.float32)
    for t in range(T):
        # Re-read W_hh from VMEM each step (vld slots have slack) instead of
        # pinning 16 vregs across the whole unrolled loop.
        gates = gates_scr[t] + jnp.dot(
            h, whh_ref[...], preferred_element_type=jnp.float32)    # (B, 4H)
        # PyTorch gate order [i, f, g, o]; H=64 -> 64-lane sub-slices.
        # TODO(synk): a roll/lane-mask gate combine could avoid the 64-lane
        # slices, but is omitted here for lowering robustness at these shapes.
        i_g = jax.nn.sigmoid(gates[:, 0 * H:1 * H])
        f_g = jax.nn.sigmoid(gates[:, 1 * H:2 * H])
        g_g = jnp.tanh(gates[:, 2 * H:3 * H])
        o_g = jax.nn.sigmoid(gates[:, 3 * H:4 * H])
        c = f_g * c + i_g * g_g
        h = o_g * jnp.tanh(c)

        # Fused output projection, written directly (no r_out scratch round
        # trip).  r_out[:-1] drops the LAST BATCH element (faithful to the
        # PyTorch source).  This matmul/store is off the recurrence's critical
        # dependence chain and hides under the next step's gate work.
        o_ref[:, t, :] = (
            jnp.dot(h[:B - 1], wout, preferred_element_type=jnp.float32)
            + bout)


@jax.jit
def rnn_forward(x, w_ih, w_hh, b_ih, b_hh, w_out, b_out):
    """x: (B, T, INPUT_SIZE) float32 (batch_first, like the PyTorch module)."""
    B, T, I = x.shape
    H = HIDDEN
    C = NUM_CLASSES

    # Weight-only preprocessing (tiny, one-off).  Activations go straight into
    # the kernel in their native batch-first layout.
    wih_t = jnp.transpose(w_ih).astype(jnp.float32)               # (I, 4H)
    whh_t = jnp.transpose(w_hh).astype(jnp.float32)               # (H, 4H)
    bias = (b_ih + b_hh).reshape(1, 4 * H).astype(jnp.float32)    # (1, 4H)
    wout_t = jnp.transpose(w_out).astype(jnp.float32)             # (H, C)
    bout = b_out.reshape(1, C).astype(jnp.float32)                # (1, C)

    # Advisory cost hint: the kernel is latency-bound, let XLA schedule
    # surrounding ops around it instead of serializing.
    flops = (2 * B * T * I * 4 * H          # input projection
             + 2 * B * T * H * 4 * H        # recurrent matmuls
             + 2 * (B - 1) * T * H * C)     # output projection
    transcendentals = 5 * B * T * H         # 3 sigmoid + 2 tanh per element
    bytes_accessed = 4 * (B * T * I + I * 4 * H + H * 4 * H + 4 * H
                          + H * C + C + (B - 1) * T * C)

    out = pl.pallas_call(
        lstm_fused_kernel,
        out_shape=jax.ShapeDtypeStruct((B - 1, T, C), jnp.float32),
        grid=(1,),
        in_specs=[
            pl.BlockSpec((B, T, I), lambda i: (0, 0, 0)),
            pl.BlockSpec((I, 4 * H), lambda i: (0, 0)),
            pl.BlockSpec((H, 4 * H), lambda i: (0, 0)),
            pl.BlockSpec((1, 4 * H), lambda i: (0, 0)),
            pl.BlockSpec((H, C), lambda i: (0, 0)),
            pl.BlockSpec((1, C), lambda i: (0, 0)),
        ],
        out_specs=pl.BlockSpec((B - 1, T, C), lambda i: (0, 0, 0)),
        scratch_shapes=[pltpu.VMEM((T, B, 4 * H), jnp.float32)],   # gates_scr
        compiler_params=pltpu.CompilerParams(
            dimension_semantics=("arbitrary",)),
        cost_estimate=pl.CostEstimate(
            flops=flops,
            transcendentals=transcendentals,
            bytes_accessed=bytes_accessed),
    )(x.astype(jnp.float32), wih_t, whh_t, bias, wout_t, bout)
    # TODO(synk): the original PyTorch forward() returns None; we return `out`
    # so the computed value is observable.
    return out


def _reference_forward(x, w_ih, w_hh, b_ih, b_hh, w_out, b_out):
    """Pure-JAX reference for sanity checking."""
    B, T, I = x.shape
    H = HIDDEN
    h = jnp.zeros((B, H), jnp.float32)
    c = jnp.zeros((B, H), jnp.float32)
    outs = []
    for t in range(T):
        gates = x[:, t, :] @ w_ih.T + h @ w_hh.T + b_ih + b_hh
        i_g = jax.nn.sigmoid(gates[:, 0 * H:1 * H])
        f_g = jax.nn.sigmoid(gates[:, 1 * H:2 * H])
        g_g = jnp.tanh(gates[:, 2 * H:3 * H])
        o_g = jax.nn.sigmoid(gates[:, 3 * H:4 * H])
        c = f_g * c + i_g * g_g
        h = o_g * jnp.tanh(c)
        outs.append(h)
    r_out = jnp.stack(outs, axis=1)            # (B, T, H)
    return r_out[:-1, :] @ w_out.T + b_out     # (B-1, T, 10)


if __name__ == "__main__":
    B, T = 4, 8
    key = jax.random.PRNGKey(0)
    ks = jax.random.split(key, 8)

    k_lstm = 1.0 / jnp.sqrt(jnp.float32(HIDDEN))
    k_lin = 1.0 / jnp.sqrt(jnp.float32(HIDDEN))

    w_ih = jax.random.uniform(ks[0], (4 * HIDDEN, INPUT_SIZE), jnp.float32,
                              minval=-k_lstm, maxval=k_lstm)
    w_hh = jax.random.uniform(ks[1], (4 * HIDDEN, HIDDEN), jnp.float32,
                              minval=-k_lstm, maxval=k_lstm)
    b_ih = jax.random.uniform(ks[2], (4 * HIDDEN,), jnp.float32,
                              minval=-k_lstm, maxval=k_lstm)
    b_hh = jax.random.uniform(ks[3], (4 * HIDDEN,), jnp.float32,
                              minval=-k_lstm, maxval=k_lstm)
    w_out = jax.random.uniform(ks[4], (NUM_CLASSES, HIDDEN), jnp.float32,
                               minval=-k_lin, maxval=k_lin)
    b_out = jax.random.uniform(ks[5], (NUM_CLASSES,), jnp.float32,
                               minval=-k_lin, maxval=k_lin)

    x = jax.random.normal(ks[6], (B, T, INPUT_SIZE), jnp.float32)

    out = rnn_forward(x, w_ih, w_hh, b_ih, b_hh, w_out, b_out)
    jax.block_until_ready(out)

    ref = _reference_forward(x, w_ih, w_hh, b_ih, b_hh, w_out, b_out)
    assert out.shape == (B - 1, T, NUM_CLASSES), out.shape
    assert jnp.allclose(out, ref, atol=1e-4, rtol=1e-4), (
        float(jnp.max(jnp.abs(out - ref))))

    print("KERNEL_OK")
</pallas_src>

<mosaic_0001>
module attributes {stable_mosaic.version = 11 : i64} {
  func.func @lstm_fused_kernel(%arg0: i32, %arg1: memref<4x8x28xf32, #tpu.memory_space<vmem>>, %arg2: memref<28x256xf32, #tpu.memory_space<vmem>>, %arg3: memref<64x256xf32, #tpu.memory_space<vmem>>, %arg4: memref<1x256xf32, #tpu.memory_space<vmem>>, %arg5: memref<64x10xf32, #tpu.memory_space<vmem>>, %arg6: memref<1x10xf32, #tpu.memory_space<vmem>>, %arg7: memref<3x8x10xf32, #tpu.memory_space<vmem>>, %arg8: memref<8x4x256xf32, #tpu.memory_space<vmem>>) attributes {dimension_semantics = [#tpu.dimension_semantics<arbitrary>], iteration_bounds = array<i64: 1>, scalar_prefetch = 0 : i64, scratch_operands = 1 : i64, tpu.core_type = #tpu.core_type<tc>, window_params = [{pipeline_mode = #tpu.pipeline_mode<synchronous>, transform_indices = @transform_0, window_bounds = array<i64: 4, 8, 28>}, {pipeline_mode = #tpu.pipeline_mode<synchronous>, transform_indices = @transform_1, window_bounds = array<i64: 28, 256>}, {pipeline_mode = #tpu.pipeline_mode<synchronous>, transform_indices = @transform_2, window_bounds = array<i64: 64, 256>}, {pipeline_mode = #tpu.pipeline_mode<synchronous>, transform_indices = @transform_3, window_bounds = array<i64: 1, 256>}, {pipeline_mode = #tpu.pipeline_mode<synchronous>, transform_indices = @transform_4, window_bounds = array<i64: 64, 10>}, {pipeline_mode = #tpu.pipeline_mode<synchronous>, transform_indices = @transform_5, window_bounds = array<i64: 1, 10>}, {pipeline_mode = #tpu.pipeline_mode<synchronous>, transform_indices = @transform_6, window_bounds = array<i64: 3, 8, 10>}]} {
    %c0 = arith.constant 0 : index
    %c0_0 = arith.constant 0 : index
    %c0_1 = arith.constant 0 : index
    %0 = vector.load %arg1[%c0, %c0_0, %c0_1] : memref<4x8x28xf32, #tpu.memory_space<vmem>>, vector<4x8x28xf32>
    %1 = vector.shape_cast %0 : vector<4x8x28xf32> to vector<32x28xf32>
    %c0_2 = arith.constant 0 : index
    %c0_3 = arith.constant 0 : index
    %2 = vector.load %arg2[%c0_2, %c0_3] : memref<28x256xf32, #tpu.memory_space<vmem>>, vector<28x256xf32>
    %cst = arith.constant dense<0.000000e+00> : vector<32x256xf32>
    %3 = tpu.matmul %1, %2, %cst {dimension_numbers = #tpu.dot_dimension_numbers<[1], [0], [0], [1], [0, 0, 1, 1], [], []>} : vector<32x28xf32>, vector<28x256xf32>, vector<32x256xf32> -> vector<32x256xf32>
    %c0_4 = arith.constant 0 : index
    %c0_5 = arith.constant 0 : index
    %4 = vector.load %arg4[%c0_4, %c0_5] : memref<1x256xf32, #tpu.memory_space<vmem>>, vector<1x256xf32>
    %5 = vector.broadcast %4 : vector<1x256xf32> to vector<32x256xf32>
    %6 = arith.addf %3, %5 : vector<32x256xf32>
    %7 = vector.shape_cast %6 : vector<32x256xf32> to vector<4x8x256xf32>
    %8 = vector.extract_strided_slice %7 {offsets = [0, 0, 0], sizes = [4, 1, 256], strides = [1, 1, 1]} : vector<4x8x256xf32> to vector<4x1x256xf32>
    %9 = vector.shape_cast %8 : vector<4x1x256xf32> to vector<4x256xf32>
    %c0_6 = arith.constant 0 : index
    %c0_7 = arith.constant 0 : index
    %c0_8 = arith.constant 0 : index
    %10 = vector.load %arg8[%c0_6, %c0_7, %c0_8] : memref<8x4x256xf32, #tpu.memory_space<vmem>>, vector<1x4x256xf32>
    %11 = vector.shape_cast %10 : vector<1x4x256xf32> to vector<4x256xf32>
    %12 = vector.shape_cast %9 : vector<4x256xf32> to vector<1x4x256xf32>
    tpu.vector_store %arg8[%c0_6, %c0_7, %c0_8], %12 {strides = array<i32>} : memref<8x4x256xf32, #tpu.memory_space<vmem>>, vector<1x4x256xf32>,
    %13 = vector.extract_strided_slice %7 {offsets = [0, 1, 0], sizes = [4, 1, 256], strides = [1, 1, 1]} : vector<4x8x256xf32> to vector<4x1x256xf32>
    %14 = vector.shape_cast %13 : vector<4x1x256xf32> to vector<4x256xf32>
    %c1 = arith.constant 1 : index
    %c0_9 = arith.constant 0 : index
    %c0_10 = arith.constant 0 : index
    %15 = vector.load %arg8[%c1, %c0_9, %c0_10] : memref<8x4x256xf32, #tpu.memory_space<vmem>>, vector<1x4x256xf32>
    %16 = vector.shape_cast %15 : vector<1x4x256xf32> to vector<4x256xf32>
    %17 = vector.shape_cast %14 : vector<4x256xf32> to vector<1x4x256xf32>
    tpu.vector_store %arg8[%c1, %c0_9, %c0_10], %17 {strides = array<i32>} : memref<8x4x256xf32, #tpu.memory_space<vmem>>, vector<1x4x256xf32>,
    %18 = vector.extract_strided_slice %7 {offsets = [0, 2, 0], sizes = [4, 1, 256], strides = [1, 1, 1]} : vector<4x8x256xf32> to vector<4x1x256xf32>
    %19 = vector.shape_cast %18 : vector<4x1x256xf32> to vector<4x256xf32>
    %c2 = arith.constant 2 : index
    %c0_11 = arith.constant 0 : index
    %c0_12 = arith.constant 0 : index
    %20 = vector.load %arg8[%c2, %c0_11, %c0_12] : memref<8x4x256xf32, #tpu.memory_space<vmem>>, vector<1x4x256xf32>
    %21 = vector.shape_cast %20 : vector<1x4x256xf32> to vector<4x256xf32>
    %22 = vector.shape_cast %19 : vector<4x256xf32> to vector<1x4x256xf32>
    tpu.vector_store %arg8[%c2, %c0_11, %c0_12], %22 {strides = array<i32>} : memref<8x4x256xf32, #tpu.memory_space<vmem>>, vector<1x4x256xf32>,
    %23 = vector.extract_strided_slice %7 {offsets = [0, 3, 0], sizes = [4, 1, 256], strides = [1, 1, 1]} : vector<4x8x256xf32> to vector<4x1x256xf32>
    %24 = vector.shape_cast %23 : vector<4x1x256xf32> to vector<4x256xf32>
    %c3 = arith.constant 3 : index
    %c0_13 = arith.constant 0 : index
    %c0_14 = arith.constant 0 : index
    %25 = vector.load %arg8[%c3, %c0_13, %c0_14] : memref<8x4x256xf32, #tpu.memory_space<vmem>>, vector<1x4x256xf32>
    %26 = vector.shape_cast %25 : vector<1x4x256xf32> to vector<4x256xf32>
    %27 = vector.shape_cast %24 : vector<4x256xf32> to vector<1x4x256xf32>
    tpu.vector_store %arg8[%c3, %c0_13, %c0_14], %27 {strides = array<i32>} : memref<8x4x256xf32, #tpu.memory_space<vmem>>, vector<1x4x256xf32>,
    %28 = vector.extract_strided_slice %7 {offsets = [0, 4, 0], sizes = [4, 1, 256], strides = [1, 1, 1]} : vector<4x8x256xf32> to vector<4x1x256xf32>
    %29 = vector.shape_cast %28 : vector<4x1x256xf32> to vector<4x256xf32>
    %c4 = arith.constant 4 : index
    %c0_15 = arith.constant 0 : index
    %c0_16 = arith.constant 0 : index
    %30 = vector.load %arg8[%c4, %c0_15, %c0_16] : memref<8x4x256xf32, #tpu.memory_space<vmem>>, vector<1x4x256xf32>
    %31 = vector.shape_cast %30 : vector<1x4x256xf32> to vector<4x256xf32>
    %32 = vector.shape_cast %29 : vector<4x256xf32> to vector<1x4x256xf32>
    tpu.vector_store %arg8[%c4, %c0_15, %c0_16], %32 {strides = array<i32>} : memref<8x4x256xf32, #tpu.memory_space<vmem>>, vector<1x4x256xf32>,
    %33 = vector.extract_strided_slice %7 {offsets = [0, 5, 0], sizes = [4, 1, 256], strides = [1, 1, 1]} : vector<4x8x256xf32> to vector<4x1x256xf32>
    %34 = vector.shape_cast %33 : vector<4x1x256xf32> to vector<4x256xf32>
    %c5 = arith.constant 5 : index
    %c0_17 = arith.constant 0 : index
    %c0_18 = arith.constant 0 : index
    %35 = vector.load %arg8[%c5, %c0_17, %c0_18] : memref<8x4x256xf32, #tpu.memory_space<vmem>>, vector<1x4x256xf32>
    %36 = vector.shape_cast %35 : vector<1x4x256xf32> to vector<4x256xf32>
    %37 = vector.shape_cast %34 : vector<4x256xf32> to vector<1x4x256xf32>
    tpu.vector_store %arg8[%c5, %c0_17, %c0_18], %37 {strides = array<i32>} : memref<8x4x256xf32, #tpu.memory_space<vmem>>, vector<1x4x256xf32>,
    %38 = vector.extract_strided_slice %7 {offsets = [0, 6, 0], sizes = [4, 1, 256], strides = [1, 1, 1]} : vector<4x8x256xf32> to vector<4x1x256xf32>
    %39 = vector.shape_cast %38 : vector<4x1x256xf32> to vector<4x256xf32>
    %c6 = arith.constant 6 : index
    %c0_19 = arith.constant 0 : index
    %c0_20 = arith.constant 0 : index
    %40 = vector.load %arg8[%c6, %c0_19, %c0_20] : memref<8x4x256xf32, #tpu.memory_space<vmem>>, vector<1x4x256xf32>
    %41 = vector.shape_cast %40 : vector<1x4x256xf32> to vector<4x256xf32>
    %42 = vector.shape_cast %39 : vector<4x256xf32> to vector<1x4x256xf32>
    tpu.vector_store %arg8[%c6, %c0_19, %c0_20], %42 {strides = array<i32>} : memref<8x4x256xf32, #tpu.memory_space<vmem>>, vector<1x4x256xf32>,
    %43 = vector.extract_strided_slice %7 {offsets = [0, 7, 0], sizes = [4, 1, 256], strides = [1, 1, 1]} : vector<4x8x256xf32> to vector<4x1x256xf32>
    %44 = vector.shape_cast %43 : vector<4x1x256xf32> to vector<4x256xf32>
    %c7 = arith.constant 7 : index
    %c0_21 = arith.constant 0 : index
    %c0_22 = arith.constant 0 : index
    %45 = vector.load %arg8[%c7, %c0_21, %c0_22] : memref<8x4x256xf32, #tpu.memory_space<vmem>>, vector<1x4x256xf32>
    %46 = vector.shape_cast %45 : vector<1x4x256xf32> to vector<4x256xf32>
    %47 = vector.shape_cast %44 : vector<4x256xf32> to vector<1x4x256xf32>
    tpu.vector_store %arg8[%c7, %c0_21, %c0_22], %47 {strides = array<i32>} : memref<8x4x256xf32, #tpu.memory_space<vmem>>, vector<1x4x256xf32>,
    %c0_23 = arith.constant 0 : index
    %c0_24 = arith.constant 0 : index
    %48 = vector.load %arg5[%c0_23, %c0_24] : memref<64x10xf32, #tpu.memory_space<vmem>>, vector<64x10xf32>
    %c0_25 = arith.constant 0 : index
    %c0_26 = arith.constant 0 : index
    %49 = vector.load %arg6[%c0_25, %c0_26] : memref<1x10xf32, #tpu.memory_space<vmem>>, vector<1x10xf32>
    %cst_27 = arith.constant 0.000000e+00 : f32
    %50 = vector.broadcast %cst_27 : f32 to vector<4x64xf32>
    %cst_28 = arith.constant 0.000000e+00 : f32
    %51 = vector.broadcast %cst_28 : f32 to vector<4x64xf32>
    %c0_29 = arith.constant 0 : index
    %c0_30 = arith.constant 0 : index
    %c0_31 = arith.constant 0 : index
    %52 = vector.load %arg8[%c0_29, %c0_30, %c0_31] : memref<8x4x256xf32, #tpu.memory_space<vmem>>, vector<1x4x256xf32>
    %53 = vector.shape_cast %52 : vector<1x4x256xf32> to vector<4x256xf32>
    %c0_32 = arith.constant 0 : index
    %c0_33 = arith.constant 0 : index
    %54 = vector.load %arg3[%c0_32, %c0_33] : memref<64x256xf32, #tpu.memory_space<vmem>>, vector<64x256xf32>
    %cst_34 = arith.constant dense<0.000000e+00> : vector<4x256xf32>
    %55 = tpu.matmul %50, %54, %cst_34 {dimension_numbers = #tpu.dot_dimension_numbers<[1], [0], [0], [1], [0, 0, 1, 1], [], []>} : vector<4x64xf32>, vector<64x256xf32>, vector<4x256xf32> -> vector<4x256xf32>
    %56 = arith.addf %53, %55 : vector<4x256xf32>
    %57 = vector.extract_strided_slice %56 {offsets = [0, 0], sizes = [4, 64], strides = [1, 1]} : vector<4x256xf32> to vector<4x64xf32>
    %58 = arith.negf %57 : vector<4x64xf32>
    %59 = math.exp %58 : vector<4x64xf32>
    %cst_35 = arith.constant 1.000000e+00 : f32
    %60 = vector.broadcast %cst_35 : f32 to vector<4x64xf32>
    %61 = arith.addf %60, %59 : vector<4x64xf32>
    %62 = arith.divf %60, %61 : vector<4x64xf32>
    %63 = vector.extract_strided_slice %56 {offsets = [0, 64], sizes = [4, 64], strides = [1, 1]} : vector<4x256xf32> to vector<4x64xf32>
    %64 = arith.negf %63 : vector<4x64xf32>
    %65 = math.exp %64 : vector<4x64xf32>
    %cst_36 = arith.constant 1.000000e+00 : f32
    %66 = vector.broadcast %cst_36 : f32 to vector<4x64xf32>
    %67 = arith.addf %66, %65 : vector<4x64xf32>
    %68 = arith.divf %66, %67 : vector<4x64xf32>
    %69 = vector.extract_strided_slice %56 {offsets = [0, 128], sizes = [4, 64], strides = [1, 1]} : vector<4x256xf32> to vector<4x64xf32>
    %70 = math.tanh %69 : vector<4x64xf32>
    %71 = vector.extract_strided_slice %56 {offsets = [0, 192], sizes = [4, 64], strides = [1, 1]} : vector<4x256xf32> to vector<4x64xf32>
    %72 = arith.negf %71 : vector<4x64xf32>
    %73 = math.exp %72 : vector<4x64xf32>
    %cst_37 = arith.constant 1.000000e+00 : f32
    %74 = vector.broadcast %cst_37 : f32 to vector<4x64xf32>
    %75 = arith.addf %74, %73 : vector<4x64xf32>
    %76 = arith.divf %74, %75 : vector<4x64xf32>
    %77 = arith.mulf %68, %51 : vector<4x64xf32>
    %78 = arith.mulf %62, %70 : vector<4x64xf32>
    %79 = arith.addf %77, %78 : vector<4x64xf32>
    %80 = math.tanh %79 : vector<4x64xf32>
    %81 = arith.mulf %76, %80 : vector<4x64xf32>
    %82 = vector.extract_strided_slice %81 {offsets = [0, 0], sizes = [3, 64], strides = [1, 1]} : vector<4x64xf32> to vector<3x64xf32>
    %cst_38 = arith.constant dense<0.000000e+00> : vector<3x10xf32>
    %83 = tpu.matmul %82, %48, %cst_38 {dimension_numbers = #tpu.dot_dimension_numbers<[1], [0], [0], [1], [0, 0, 1, 1], [], []>} : vector<3x64xf32>, vector<64x10xf32>, vector<3x10xf32> -> vector<3x10xf32>
    %84 = vector.broadcast %49 : vector<1x10xf32> to vector<3x10xf32>
    %85 = arith.addf %83, %84 : vector<3x10xf32>
    %c0_39 = arith.constant 0 : index
    %c0_40 = arith.constant 0 : index
    %c0_41 = arith.constant 0 : index
    %86 = vector.load %arg7[%c0_39, %c0_40, %c0_41] : memref<3x8x10xf32, #tpu.memory_space<vmem>>, vector<3x1x10xf32>
    %87 = vector.shape_cast %86 : vector<3x1x10xf32> to vector<3x10xf32>
    %88 = vector.shape_cast %85 : vector<3x10xf32> to vector<3x1x10xf32>
    tpu.vector_store %arg7[%c0_39, %c0_40, %c0_41], %88 {strides = array<i32>} : memref<3x8x10xf32, #tpu.memory_space<vmem>>, vector<3x1x10xf32>,
    %c1_42 = arith.constant 1 : index
    %c0_43 = arith.constant 0 : index
    %c0_44 = arith.constant 0 : index
    %89 = vector.load %arg8[%c1_42, %c0_43, %c0_44] : memref<8x4x256xf32, #tpu.memory_space<vmem>>, vector<1x4x256xf32>
    %90 = vector.shape_cast %89 : vector<1x4x256xf32> to vector<4x256xf32>
    %c0_45 = arith.constant 0 : index
    %c0_46 = arith.constant 0 : index
    %91 = vector.load %arg3[%c0_45, %c0_46] : memref<64x256xf32, #tpu.memory_space<vmem>>, vector<64x256xf32>
    %cst_47 = arith.constant dense<0.000000e+00> : vector<4x256xf32>
    %92 = tpu.matmul %81, %91, %cst_47 {dimension_numbers = #tpu.dot_dimension_numbers<[1], [0], [0], [1], [0, 0, 1, 1], [], []>} : vector<4x64xf32>, vector<64x256xf32>, vector<4x256xf32> -> vector<4x256xf32>
    %93 = arith.addf %90, %92 : vector<4x256xf32>
    %94 = vector.extract_strided_slice %93 {offsets = [0, 0], sizes = [4, 64], strides = [1, 1]} : vector<4x256xf32> to vector<4x64xf32>
    %95 = arith.negf %94 : vector<4x64xf32>
    %96 = math.exp %95 : vector<4x64xf32>
    %cst_48 = arith.constant 1.000000e+00 : f32
    %97 = vector.broadcast %cst_48 : f32 to vector<4x64xf32>
    %98 = arith.addf %97, %96 : vector<4x64xf32>
    %99 = arith.divf %97, %98 : vector<4x64xf32>
    %100 = vector.extract_strided_slice %93 {offsets = [0, 64], sizes = [4, 64], strides = [1, 1]} : vector<4x256xf32> to vector<4x64xf32>
    %101 = arith.negf %100 : vector<4x64xf32>
    %102 = math.exp %101 : vector<4x64xf32>
    %cst_49 = arith.constant 1.000000e+00 : f32
    %103 = vector.broadcast %cst_49 : f32 to vector<4x64xf32>
    %104 = arith.addf %103, %102 : vector<4x64xf32>
    %105 = arith.divf %103, %104 : vector<4x64xf32>
    %106 = vector.extract_strided_slice %93 {offsets = [0, 128], sizes = [4, 64], strides = [1, 1]} : vector<4x256xf32> to vector<4x64xf32>
    %107 = math.tanh %106 : vector<4x64xf32>
    %108 = vector.extract_strided_slice %93 {offsets = [0, 192], sizes = [4, 64], strides = [1, 1]} : vector<4x256xf32> to vector<4x64xf32>
    %109 = arith.negf %108 : vector<4x64xf32>
    %110 = math.exp %109 : vector<4x64xf32>
    %cst_50 = arith.constant 1.000000e+00 : f32
    %111 = vector.broadcast %cst_50 : f32 to vector<4x64xf32>
    %112 = arith.addf %111, %110 : vector<4x64xf32>
    %113 = arith.divf %111, %112 : vector<4x64xf32>
    %114 = arith.mulf %105, %79 : vector<4x64xf32>
    %115 = arith.mulf %99, %107 : vector<4x64xf32>
    %116 = arith.addf %114, %115 : vector<4x64xf32>
    %117 = math.tanh %116 : vector<4x64xf32>
    %118 = arith.mulf %113, %117 : vector<4x64xf32>
    %119 = vector.extract_strided_slice %118 {offsets = [0, 0], sizes = [3, 64], strides = [1, 1]} : vector<4x64xf32> to vector<3x64xf32>
    %cst_51 = arith.constant dense<0.000000e+00> : vector<3x10xf32>
    %120 = tpu.matmul %119, %48, %cst_51 {dimension_numbers = #tpu.dot_dimension_numbers<[1], [0], [0], [1], [0, 0, 1, 1], [], []>} : vector<3x64xf32>, vector<64x10xf32>, vector<3x10xf32> -> vector<3x10xf32>
    %121 = vector.broadcast %49 : vector<1x10xf32> to vector<3x10xf32>
    %122 = arith.addf %120, %121 : vector<3x10xf32>
    %c0_52 = arith.constant 0 : index
    %c1_53 = arith.constant 1 : index
    %c0_54 = arith.constant 0 : index
    %123 = vector.load %arg7[%c0_52, %c1_53, %c0_54] : memref<3x8x10xf32, #tpu.memory_space<vmem>>, vector<3x1x10xf32>
    %124 = vector.shape_cast %123 : vector<3x1x10xf32> to vector<3x10xf32>
    %125 = vector.shape_cast %122 : vector<3x10xf32> to vector<3x1x10xf32>
    tpu.vector_store %arg7[%c0_52, %c1_53, %c0_54], %125 {strides = array<i32>} : memref<3x8x10xf32, #tpu.memory_space<vmem>>, vector<3x1x10xf32>,
    %c2_55 = arith.constant 2 : index
    %c0_56 = arith.constant 0 : index
    %c0_57 = arith.constant 0 : index
    %126 = vector.load %arg8[%c2_55, %c0_56, %c0_57] : memref<8x4x256xf32, #tpu.memory_space<vmem>>, vector<1x4x256xf32>
    %127 = vector.shape_cast %126 : vector<1x4x256xf32> to vector<4x256xf32>
    %c0_58 = arith.constant 0 : index
    %c0_59 = arith.constant 0 : index
    %128 = vector.load %arg3[%c0_58, %c0_59] : memref<64x256xf32, #tpu.memory_space<vmem>>, vector<64x256xf32>
    %cst_60 = arith.constant dense<0.000000e+00> : vector<4x256xf32>
    %129 = tpu.matmul %118, %128, %cst_60 {dimension_numbers = #tpu.dot_dimension_numbers<[1], [0], [0], [1], [0, 0, 1, 1], [], []>} : vector<4x64xf32>, vector<64x256xf32>, vector<4x256xf32> -> vector<4x256xf32>
    %130 = arith.addf %127, %129 : vector<4x256xf32>
    %131 = vector.extract_strided_slice %130 {offsets = [0, 0], sizes = [4, 64], strides = [1, 1]} : vector<4x256xf32> to vector<4x64xf32>
    %132 = arith.negf %131 : vector<4x64xf32>
    %133 = math.exp %132 : vector<4x64xf32>
    %cst_61 = arith.constant 1.000000e+00 : f32
    %134 = vector.broadcast %cst_61 : f32 to vector<4x64xf32>
    %135 = arith.addf %134, %133 : vector<4x64xf32>
    %136 = arith.divf %134, %135 : vector<4x64xf32>
    %137 = vector.extract_strided_slice %130 {offsets = [0, 64], sizes = [4, 64], strides = [1, 1]} : vector<4x256xf32> to vector<4x64xf32>
    %138 = arith.negf %137 : vector<4x64xf32>
    %139 = math.exp %138 : vector<4x64xf32>
    %cst_62 = arith.constant 1.000000e+00 : f32
    %140 = vector.broadcast %cst_62 : f32 to vector<4x64xf32>
    %141 = arith.addf %140, %139 : vector<4x64xf32>
    %142 = arith.divf %140, %141 : vector<4x64xf32>
    %143 = vector.extract_strided_slice %130 {offsets = [0, 128], sizes = [4, 64], strides = [1, 1]} : vector<4x256xf32> to vector<4x64xf32>
    %144 = math.tanh %143 : vector<4x64xf32>
    %145 = vector.extract_strided_slice %130 {offsets = [0, 192], sizes = [4, 64], strides = [1, 1]} : vector<4x256xf32> to vector<4x64xf32>
    %146 = arith.negf %145 : vector<4x64xf32>
    %147 = math.exp %146 : vector<4x64xf32>
    %cst_63 = arith.constant 1.000000e+00 : f32
    %148 = vector.broadcast %cst_63 : f32 to vector<4x64xf32>
    %149 = arith.addf %148, %147 : vector<4x64xf32>
    %150 = arith.divf %148, %149 : vector<4x64xf32>
    %151 = arith.mulf %142, %116 : vector<4x64xf32>
    %152 = arith.mulf %136, %144 : vector<4x64xf32>
    %153 = arith.addf %151, %152 : vector<4x64xf32>
    %154 = math.tanh %153 : vector<4x64xf32>
    %155 = arith.mulf %150, %154 : vector<4x64xf32>
    %156 = vector.extract_strided_slice %155 {offsets = [0, 0], sizes = [3, 64], strides = [1, 1]} : vector<4x64xf32> to vector<3x64xf32>
    %cst_64 = arith.constant dense<0.000000e+00> : vector<3x10xf32>
    %157 = tpu.matmul %156, %48, %cst_64 {dimension_numbers = #tpu.dot_dimension_numbers<[1], [0], [0], [1], [0, 0, 1, 1], [], []>} : vector<3x64xf32>, vector<64x10xf32>, vector<3x10xf32> -> vector<3x10xf32>
    %158 = vector.broadcast %49 : vector<1x10xf32> to vector<3x10xf32>
    %159 = arith.addf %157, %158 : vector<3x10xf32>
    %c0_65 = arith.constant 0 : index
    %c2_66 = arith.constant 2 : index
    %c0_67 = arith.constant 0 : index
    %160 = vector.load %arg7[%c0_65, %c2_66, %c0_67] : memref<3x8x10xf32, #tpu.memory_space<vmem>>, vector<3x1x10xf32>
    %161 = vector.shape_cast %160 : vector<3x1x10xf32> to vector<3x10xf32>
    %162 = vector.shape_cast %159 : vector<3x10xf32> to vector<3x1x10xf32>
    tpu.vector_store %arg7[%c0_65, %c2_66, %c0_67], %162 {strides = array<i32>} : memref<3x8x10xf32, #tpu.memory_space<vmem>>, vector<3x1x10xf32>,
    %c3_68 = arith.constant 3 : index
    %c0_69 = arith.constant 0 : index
    %c0_70 = arith.constant 0 : index
    %163 = vector.load %arg8[%c3_68, %c0_69, %c0_70] : memref<8x4x256xf32, #tpu.memory_space<vmem>>, vector<1x4x256xf32>
    %164 = vector.shape_cast %163 : vector<1x4x256xf32> to vector<4x256xf32>
    %c0_71 = arith.constant 0 : index
    %c0_72 = arith.constant 0 : index
    %165 = vector.load %arg3[%c0_71, %c0_72] : memref<64x256xf32, #tpu.memory_space<vmem>>, vector<64x256xf32>
    %cst_73 = arith.constant dense<0.000000e+00> : vector<4x256xf32>
    %166 = tpu.matmul %155, %165, %cst_73 {dimension_numbers = #tpu.dot_dimension_numbers<[1], [0], [0], [1], [0, 0, 1, 1], [], []>} : vector<4x64xf32>, vector<64x256xf32>, vector<4x256xf32> -> vector<4x256xf32>
    %167 = arith.addf %164, %166 : vector<4x256xf32>
    %168 = vector.extract_strided_slice %167 {offsets = [0, 0], sizes = [4, 64], strides = [1, 1]} : vector<4x256xf32> to vector<4x64xf32>
    %169 = arith.negf %168 : vector<4x64xf32>
    %170 = math.exp %169 : vector<4x64xf32>
    %cst_74 = arith.constant 1.000000e+00 : f32
    %171 = vector.broadcast %cst_74 : f32 to vector<4x64xf32>
    %172 = arith.addf %171, %170 : vector<4x64xf32>
    %173 = arith.divf %171, %172 : vector<4x64xf32>
    %174 = vector.extract_strided_slice %167 {offsets = [0, 64], sizes = [4, 64], strides = [1, 1]} : vector<4x256xf32> to vector<4x64xf32>
    %175 = arith.negf %174 : vector<4x64xf32>
    %176 = math.exp %175 : vector<4x64xf32>
    %cst_75 = arith.constant 1.000000e+00 : f32
    %177 = vector.broadcast %cst_75 : f32 to vector<4x64xf32>
    %178 = arith.addf %177, %176 : vector<4x64xf32>
    %179 = arith.divf %177, %178 : vector<4x64xf32>
    %180 = vector.extract_strided_slice %167 {offsets = [0, 128], sizes = [4, 64], strides = [1, 1]} : vector<4x256xf32> to vector<4x64xf32>
    %181 = math.tanh %180 : vector<4x64xf32>
    %182 = vector.extract_strided_slice %167 {offsets = [0, 192], sizes = [4, 64], strides = [1, 1]} : vector<4x256xf32> to vector<4x64xf32>
    %183 = arith.negf %182 : vector<4x64xf32>
    %184 = math.exp %183 : vector<4x64xf32>
    %cst_76 = arith.constant 1.000000e+00 : f32
    %185 = vector.broadcast %cst_76 : f32 to vector<4x64xf32>
    %186 = arith.addf %185, %184 : vector<4x64xf32>
    %187 = arith.divf %185, %186 : vector<4x64xf32>
    %188 = arith.mulf %179, %153 : vector<4x64xf32>
    %189 = arith.mulf %173, %181 : vector<4x64xf32>
    %190 = arith.addf %188, %189 : vector<4x64xf32>
    %191 = math.tanh %190 : vector<4x64xf32>
    %192 = arith.mulf %187, %191 : vector<4x64xf32>
    %193 = vector.extract_strided_slice %192 {offsets = [0, 0], sizes = [3, 64], strides = [1, 1]} : vector<4x64xf32> to vector<3x64xf32>
    %cst_77 = arith.constant dense<0.000000e+00> : vector<3x10xf32>
    %194 = tpu.matmul %193, %48, %cst_77 {dimension_numbers = #tpu.dot_dimension_numbers<[1], [0], [0], [1], [0, 0, 1, 1], [], []>} : vector<3x64xf32>, vector<64x10xf32>, vector<3x10xf32> -> vector<3x10xf32>
    %195 = vector.broadcast %49 : vector<1x10xf32> to vector<3x10xf32>
    %196 = arith.addf %194, %195 : vector<3x10xf32>
    %c0_78 = arith.constant 0 : index
    %c3_79 = arith.constant 3 : index
    %c0_80 = arith.constant 0 : index
    %197 = vector.load %arg7[%c0_78, %c3_79, %c0_80] : memref<3x8x10xf32, #tpu.memory_space<vmem>>, vector<3x1x10xf32>
    %198 = vector.shape_cast %197 : vector<3x1x10xf32> to vector<3x10xf32>
    %199 = vector.shape_cast %196 : vector<3x10xf32> to vector<3x1x10xf32>
    tpu.vector_store %arg7[%c0_78, %c3_79, %c0_80], %199 {strides = array<i32>} : memref<3x8x10xf32, #tpu.memory_space<vmem>>, vector<3x1x10xf32>,
    %c4_81 = arith.constant 4 : index
    %c0_82 = arith.constant 0 : index
    %c0_83 = arith.constant 0 : index
    %200 = vector.load %arg8[%c4_81, %c0_82, %c0_83] : memref<8x4x256xf32, #tpu.memory_space<vmem>>, vector<1x4x256xf32>
    %201 = vector.shape_cast %200 : vector<1x4x256xf32> to vector<4x256xf32>
    %c0_84 = arith.constant 0 : index
    %c0_85 = arith.constant 0 : index
    %202 = vector.load %arg3[%c0_84, %c0_85] : memref<64x256xf32, #tpu.memory_space<vmem>>, vector<64x256xf32>
    %cst_86 = arith.constant dense<0.000000e+00> : vector<4x256xf32>
    %203 = tpu.matmul %192, %202, %cst_86 {dimension_numbers = #tpu.dot_dimension_numbers<[1], [0], [0], [1], [0, 0, 1, 1], [], []>} : vector<4x64xf32>, vector<64x256xf32>, vector<4x256xf32> -> vector<4x256xf32>
    %204 = arith.addf %201, %203 : vector<4x256xf32>
    %205 = vector.extract_strided_slice %204 {offsets = [0, 0], sizes = [4, 64], strides = [1, 1]} : vector<4x256xf32> to vector<4x64xf32>
    %206 = arith.negf %205 : vector<4x64xf32>
    %207 = math.exp %206 : vector<4x64xf32>
    %cst_87 = arith.constant 1.000000e+00 : f32
    %208 = vector.broadcast %cst_87 : f32 to vector<4x64xf32>
    %209 = arith.addf %208, %207 : vector<4x64xf32>
    %210 = arith.divf %208, %209 : vector<4x64xf32>
    %211 = vector.extract_strided_slice %204 {offsets = [0, 64], sizes = [4, 64], strides = [1, 1]} : vector<4x256xf32> to vector<4x64xf32>
    %212 = arith.negf %211 : vector<4x64xf32>
    %213 = math.exp %212 : vector<4x64xf32>
    %cst_88 = arith.constant 1.000000e+00 : f32
    %214 = vector.broadcast %cst_88 : f32 to vector<4x64xf32>
    %215 = arith.addf %214, %213 : vector<4x64xf32>
    %216 = arith.divf %214, %215 : vector<4x64xf32>
    %217 = vector.extract_strided_slice %204 {offsets = [0, 128], sizes = [4, 64], strides = [1, 1]} : vector<4x256xf32> to vector<4x64xf32>
    %218 = math.tanh %217 : vector<4x64xf32>
    %219 = vector.extract_strided_slice %204 {offsets = [0, 192], sizes = [4, 64], strides = [1, 1]} : vector<4x256xf32> to vector<4x64xf32>
    %220 = arith.negf %219 : vector<4x64xf32>
    %221 = math.exp %220 : vector<4x64xf32>
    %cst_89 = arith.constant 1.000000e+00 : f32
    %222 = vector.broadcast %cst_89 : f32 to vector<4x64xf32>
    %223 = arith.addf %222, %221 : vector<4x64xf32>
    %224 = arith.divf %222, %223 : vector<4x64xf32>
    %225 = arith.mulf %216, %190 : vector<4x64xf32>
    %226 = arith.mulf %210, %218 : vector<4x64xf32>
    %227 = arith.addf %225, %226 : vector<4x64xf32>
    %228 = math.tanh %227 : vector<4x64xf32>
    %229 = arith.mulf %224, %228 : vector<4x64xf32>
    %230 = vector.extract_strided_slice %229 {offsets = [0, 0], sizes = [3, 64], strides = [1, 1]} : vector<4x64xf32> to vector<3x64xf32>
    %cst_90 = arith.constant dense<0.000000e+00> : vector<3x10xf32>
    %231 = tpu.matmul %230, %48, %cst_90 {dimension_numbers = #tpu.dot_dimension_numbers<[1], [0], [0], [1], [0, 0, 1, 1], [], []>} : vector<3x64xf32>, vector<64x10xf32>, vector<3x10xf32> -> vector<3x10xf32>
    %232 = vector.broadcast %49 : vector<1x10xf32> to vector<3x10xf32>
    %233 = arith.addf %231, %232 : vector<3x10xf32>
    %c0_91 = arith.constant 0 : index
    %c4_92 = arith.constant 4 : index
    %c0_93 = arith.constant 0 : index
    %234 = vector.load %arg7[%c0_91, %c4_92, %c0_93] : memref<3x8x10xf32, #tpu.memory_space<vmem>>, vector<3x1x10xf32>
    %235 = vector.shape_cast %234 : vector<3x1x10xf32> to vector<3x10xf32>
    %236 = vector.shape_cast %233 : vector<3x10xf32> to vector<3x1x10xf32>
    tpu.vector_store %arg7[%c0_91, %c4_92, %c0_93], %236 {strides = array<i32>} : memref<3x8x10xf32, #tpu.memory_space<vmem>>, vector<3x1x10xf32>,
    %c5_94 = arith.constant 5 : index
    %c0_95 = arith.constant 0 : index
    %c0_96 = arith.constant 0 : index
    %237 = vector.load %arg8[%c5_94, %c0_95, %c0_96] : memref<8x4x256xf32, #tpu.memory_space<vmem>>, vector<1x4x256xf32>
    %238 = vector.shape_cast %237 : vector<1x4x256xf32> to vector<4x256xf32>
    %c0_97 = arith.constant 0 : index
    %c0_98 = arith.constant 0 : index
    %239 = vector.load %arg3[%c0_97, %c0_98] : memref<64x256xf32, #tpu.memory_space<vmem>>, vector<64x256xf32>
    %cst_99 = arith.constant dense<0.000000e+00> : vector<4x256xf32>
    %240 = tpu.matmul %229, %239, %cst_99 {dimension_numbers = #tpu.dot_dimension_numbers<[1], [0], [0], [1], [0, 0, 1, 1], [], []>} : vector<4x64xf32>, vector<64x256xf32>, vector<4x256xf32> -> vector<4x256xf32>
    %241 = arith.addf %238, %240 : vector<4x256xf32>
    %242 = vector.extract_strided_slice %241 {offsets = [0, 0], sizes = [4, 64], strides = [1, 1]} : vector<4x256xf32> to vector<4x64xf32>
    %243 = arith.negf %242 : vector<4x64xf32>
    %244 = math.exp %243 : vector<4x64xf32>
    %cst_100 = arith.constant 1.000000e+00 : f32
    %245 = vector.broadcast %cst_100 : f32 to vector<4x64xf32>
    %246 = arith.addf %245, %244 : vector<4x64xf32>
    %247 = arith.divf %245, %246 : vector<4x64xf32>
    %248 = vector.extract_strided_slice %241 {offsets = [0, 64], sizes = [4, 64], strides = [1, 1]} : vector<4x256xf32> to vector<4x64xf32>
    %249 = arith.negf %248 : vector<4x64xf32>
    %250 = math.exp %249 : vector<4x64xf32>
    %cst_101 = arith.constant 1.000000e+00 : f32
    %251 = vector.broadcast %cst_101 : f32 to vector<4x64xf32>
    %252 = arith.addf %251, %250 : vector<4x64xf32>
    %253 = arith.divf %251, %252 : vector<4x64xf32>
    %254 = vector.extract_strided_slice %241 {offsets = [0, 128], sizes = [4, 64], strides = [1, 1]} : vector<4x256xf32> to vector<4x64xf32>
    %255 = math.tanh %254 : vector<4x64xf32>
    %256 = vector.extract_strided_slice %241 {offsets = [0, 192], sizes = [4, 64], strides = [1, 1]} : vector<4x256xf32> to vector<4x64xf32>
    %257 = arith.negf %256 : vector<4x64xf32>
    %258 = math.exp %257 : vector<4x64xf32>
    %cst_102 = arith.constant 1.000000e+00 : f32
    %259 = vector.broadcast %cst_102 : f32 to vector<4x64xf32>
    %260 = arith.addf %259, %258 : vector<4x64xf32>
    %261 = arith.divf %259, %260 : vector<4x64xf32>
    %262 = arith.mulf %253, %227 : vector<4x64xf32>
    %263 = arith.mulf %247, %255 : vector<4x64xf32>
    %264 = arith.addf %262, %263 : vector<4x64xf32>
    %265 = math.tanh %264 : vector<4x64xf32>
    %266 = arith.mulf %261, %265 : vector<4x64xf32>
    %267 = vector.extract_strided_slice %266 {offsets = [0, 0], sizes = [3, 64], strides = [1, 1]} : vector<4x64xf32> to vector<3x64xf32>
    %cst_103 = arith.constant dense<0.000000e+00> : vector<3x10xf32>
    %268 = tpu.matmul %267, %48, %cst_103 {dimension_numbers = #tpu.dot_dimension_numbers<[1], [0], [0], [1], [0, 0, 1, 1], [], []>} : vector<3x64xf32>, vector<64x10xf32>, vector<3x10xf32> -> vector<3x10xf32>
    %269 = vector.broadcast %49 : vector<1x10xf32> to vector<3x10xf32>
    %270 = arith.addf %268, %269 : vector<3x10xf32>
    %c0_104 = arith.constant 0 : index
    %c5_105 = arith.constant 5 : index
    %c0_106 = arith.constant 0 : index
    %271 = vector.load %arg7[%c0_104, %c5_105, %c0_106] : memref<3x8x10xf32, #tpu.memory_space<vmem>>, vector<3x1x10xf32>
    %272 = vector.shape_cast %271 : vector<3x1x10xf32> to vector<3x10xf32>
    %273 = vector.shape_cast %270 : vector<3x10xf32> to vector<3x1x10xf32>
    tpu.vector_store %arg7[%c0_104, %c5_105, %c0_106], %273 {strides = array<i32>} : memref<3x8x10xf32, #tpu.memory_space<vmem>>, vector<3x1x10xf32>,
    %c6_107 = arith.constant 6 : index
    %c0_108 = arith.constant 0 : index
    %c0_109 = arith.constant 0 : index
    %274 = vector.load %arg8[%c6_107, %c0_108, %c0_109] : memref<8x4x256xf32, #tpu.memory_space<vmem>>, vector<1x4x256xf32>
    %275 = vector.shape_cast %274 : vector<1x4x256xf32> to vector<4x256xf32>
    %c0_110 = arith.constant 0 : index
    %c0_111 = arith.constant 0 : index
    %276 = vector.load %arg3[%c0_110, %c0_111] : memref<64x256xf32, #tpu.memory_space<vmem>>, vector<64x256xf32>
    %cst_112 = arith.constant dense<0.000000e+00> : vector<4x256xf32>
    %277 = tpu.matmul %266, %276, %cst_112 {dimension_numbers = #tpu.dot_dimension_numbers<[1], [0], [0], [1], [0, 0, 1, 1], [], []>} : vector<4x64xf32>, vector<64x256xf32>, vector<4x256xf32> -> vector<4x256xf32>
    %278 = arith.addf %275, %277 : vector<4x256xf32>
    %279 = vector.extract_strided_slice %278 {offsets = [0, 0], sizes = [4, 64], strides = [1, 1]} : vector<4x256xf32> to vector<4x64xf32>
    %280 = arith.negf %279 : vector<4x64xf32>
    %281 = math.exp %280 : vector<4x64xf32>
    %cst_113 = arith.constant 1.000000e+00 : f32
    %282 = vector.broadcast %cst_113 : f32 to vector<4x64xf32>
    %283 = arith.addf %282, %281 : vector<4x64xf32>
    %284 = arith.divf %282, %283 : vector<4x64xf32>
    %285 = vector.extract_strided_slice %278 {offsets = [0, 64], sizes = [4, 64], strides = [1, 1]} : vector<4x256xf32> to vector<4x64xf32>
    %286 = arith.negf %285 : vector<4x64xf32>
    %287 = math.exp %286 : vector<4x64xf32>
    %cst_114 = arith.constant 1.000000e+00 : f32
    %288 = vector.broadcast %cst_114 : f32 to vector<4x64xf32>
    %289 = arith.addf %288, %287 : vector<4x64xf32>
    %290 = arith.divf %288, %289 : vector<4x64xf32>
    %291 = vector.extract_strided_slice %278 {offsets = [0, 128], sizes = [4, 64], strides = [1, 1]} : vector<4x256xf32> to vector<4x64xf32>
    %292 = math.tanh %291 : vector<4x64xf32>
    %293 = vector.extract_strided_slice %278 {offsets = [0, 192], sizes = [4, 64], strides = [1, 1]} : vector<4x256xf32> to vector<4x64xf32>
    %294 = arith.negf %293 : vector<4x64xf32>
    %295 = math.exp %294 : vector<4x64xf32>
    %cst_115 = arith.constant 1.000000e+00 : f32
    %296 = vector.broadcast %cst_115 : f32 to vector<4x64xf32>
    %297 = arith.addf %296, %295 : vector<4x64xf32>
    %298 = arith.divf %296, %297 : vector<4x64xf32>
    %299 = arith.mulf %290, %264 : vector<4x64xf32>
    %300 = arith.mulf %284, %292 : vector<4x64xf32>
    %301 = arith.addf %299, %300 : vector<4x64xf32>
    %302 = math.tanh %301 : vector<4x64xf32>
    %303 = arith.mulf %298, %302 : vector<4x64xf32>
    %304 = vector.extract_strided_slice %303 {offsets = [0, 0], sizes = [3, 64], strides = [1, 1]} : vector<4x64xf32> to vector<3x64xf32>
    %cst_116 = arith.constant dense<0.000000e+00> : vector<3x10xf32>
    %305 = tpu.matmul %304, %48, %cst_116 {dimension_numbers = #tpu.dot_dimension_numbers<[1], [0], [0], [1], [0, 0, 1, 1], [], []>} : vector<3x64xf32>, vector<64x10xf32>, vector<3x10xf32> -> vector<3x10xf32>
    %306 = vector.broadcast %49 : vector<1x10xf32> to vector<3x10xf32>
    %307 = arith.addf %305, %306 : vector<3x10xf32>
    %c0_117 = arith.constant 0 : index
    %c6_118 = arith.constant 6 : index
    %c0_119 = arith.constant 0 : index
    %308 = vector.load %arg7[%c0_117, %c6_118, %c0_119] : memref<3x8x10xf32, #tpu.memory_space<vmem>>, vector<3x1x10xf32>
    %309 = vector.shape_cast %308 : vector<3x1x10xf32> to vector<3x10xf32>
    %310 = vector.shape_cast %307 : vector<3x10xf32> to vector<3x1x10xf32>
    tpu.vector_store %arg7[%c0_117, %c6_118, %c0_119], %310 {strides = array<i32>} : memref<3x8x10xf32, #tpu.memory_space<vmem>>, vector<3x1x10xf32>,
    %c7_120 = arith.constant 7 : index
    %c0_121 = arith.constant 0 : index
    %c0_122 = arith.constant 0 : index
    %311 = vector.load %arg8[%c7_120, %c0_121, %c0_122] : memref<8x4x256xf32, #tpu.memory_space<vmem>>, vector<1x4x256xf32>
    %312 = vector.shape_cast %311 : vector<1x4x256xf32> to vector<4x256xf32>
    %c0_123 = arith.constant 0 : index
    %c0_124 = arith.constant 0 : index
    %313 = vector.load %arg3[%c0_123, %c0_124] : memref<64x256xf32, #tpu.memory_space<vmem>>, vector<64x256xf32>
    %cst_125 = arith.constant dense<0.000000e+00> : vector<4x256xf32>
    %314 = tpu.matmul %303, %313, %cst_125 {dimension_numbers = #tpu.dot_dimension_numbers<[1], [0], [0], [1], [0, 0, 1, 1], [], []>} : vector<4x64xf32>, vector<64x256xf32>, vector<4x256xf32> -> vector<4x256xf32>
    %315 = arith.addf %312, %314 : vector<4x256xf32>
    %316 = vector.extract_strided_slice %315 {offsets = [0, 0], sizes = [4, 64], strides = [1, 1]} : vector<4x256xf32> to vector<4x64xf32>
    %317 = arith.negf %316 : vector<4x64xf32>
    %318 = math.exp %317 : vector<4x64xf32>
    %cst_126 = arith.constant 1.000000e+00 : f32
    %319 = vector.broadcast %cst_126 : f32 to vector<4x64xf32>
    %320 = arith.addf %319, %318 : vector<4x64xf32>
    %321 = arith.divf %319, %320 : vector<4x64xf32>
    %322 = vector.extract_strided_slice %315 {offsets = [0, 64], sizes = [4, 64], strides = [1, 1]} : vector<4x256xf32> to vector<4x64xf32>
    %323 = arith.negf %322 : vector<4x64xf32>
    %324 = math.exp %323 : vector<4x64xf32>
    %cst_127 = arith.constant 1.000000e+00 : f32
    %325 = vector.broadcast %cst_127 : f32 to vector<4x64xf32>
    %326 = arith.addf %325, %324 : vector<4x64xf32>
    %327 = arith.divf %325, %326 : vector<4x64xf32>
    %328 = vector.extract_strided_slice %315 {offsets = [0, 128], sizes = [4, 64], strides = [1, 1]} : vector<4x256xf32> to vector<4x64xf32>
    %329 = math.tanh %328 : vector<4x64xf32>
    %330 = vector.extract_strided_slice %315 {offsets = [0, 192], sizes = [4, 64], strides = [1, 1]} : vector<4x256xf32> to vector<4x64xf32>
    %331 = arith.negf %330 : vector<4x64xf32>
    %332 = math.exp %331 : vector<4x64xf32>
    %cst_128 = arith.constant 1.000000e+00 : f32
    %333 = vector.broadcast %cst_128 : f32 to vector<4x64xf32>
    %334 = arith.addf %333, %332 : vector<4x64xf32>
    %335 = arith.divf %333, %334 : vector<4x64xf32>
    %336 = arith.mulf %327, %301 : vector<4x64xf32>
    %337 = arith.mulf %321, %329 : vector<4x64xf32>
    %338 = arith.addf %336, %337 : vector<4x64xf32>
    %339 = math.tanh %338 : vector<4x64xf32>
    %340 = arith.mulf %335, %339 : vector<4x64xf32>
    %341 = vector.extract_strided_slice %340 {offsets = [0, 0], sizes = [3, 64], strides = [1, 1]} : vector<4x64xf32> to vector<3x64xf32>
    %cst_129 = arith.constant dense<0.000000e+00> : vector<3x10xf32>
    %342 = tpu.matmul %341, %48, %cst_129 {dimension_numbers = #tpu.dot_dimension_numbers<[1], [0], [0], [1], [0, 0, 1, 1], [], []>} : vector<3x64xf32>, vector<64x10xf32>, vector<3x10xf32> -> vector<3x10xf32>
    %343 = vector.broadcast %49 : vector<1x10xf32> to vector<3x10xf32>
    %344 = arith.addf %342, %343 : vector<3x10xf32>
    %c0_130 = arith.constant 0 : index
    %c7_131 = arith.constant 7 : index
    %c0_132 = arith.constant 0 : index
    %345 = vector.load %arg7[%c0_130, %c7_131, %c0_132] : memref<3x8x10xf32, #tpu.memory_space<vmem>>, vector<3x1x10xf32>
    %346 = vector.shape_cast %345 : vector<3x1x10xf32> to vector<3x10xf32>
    %347 = vector.shape_cast %344 : vector<3x10xf32> to vector<3x1x10xf32>
    tpu.vector_store %arg7[%c0_130, %c7_131, %c0_132], %347 {strides = array<i32>} : memref<3x8x10xf32, #tpu.memory_space<vmem>>, vector<3x1x10xf32>,
    return
  }
  func.func @transform_0(%arg0: i32) -> (i32, i32, i32) {
    %c0_i32 = arith.constant 0 : i32
    %c0_i32_0 = arith.constant 0 : i32
    %c0_i32_1 = arith.constant 0 : i32
    %c0_i32_2 = arith.constant 0 : i32
    return %c0_i32, %c0_i32_0, %c0_i32_1 : i32, i32, i32
  }
  func.func @transform_1(%arg0: i32) -> (i32, i32) {
    %c0_i32 = arith.constant 0 : i32
    %c0_i32_0 = arith.constant 0 : i32
    %c0_i32_1 = arith.constant 0 : i32
    return %c0_i32, %c0_i32_0 : i32, i32
  }
  func.func @transform_2(%arg0: i32) -> (i32, i32) {
    %c0_i32 = arith.constant 0 : i32
    %c0_i32_0 = arith.constant 0 : i32
    %c0_i32_1 = arith.constant 0 : i32
    return %c0_i32, %c0_i32_0 : i32, i32
  }
  func.func @transform_3(%arg0: i32) -> (i32, i32) {
    %c0_i32 = arith.constant 0 : i32
    %c0_i32_0 = arith.constant 0 : i32
    %c0_i32_1 = arith.constant 0 : i32
    return %c0_i32, %c0_i32_0 : i32, i32
  }
  func.func @transform_4(%arg0: i32) -> (i32, i32) {
    %c0_i32 = arith.constant 0 : i32
    %c0_i32_0 = arith.constant 0 : i32
    %c0_i32_1 = arith.constant 0 : i32
    return %c0_i32, %c0_i32_0 : i32, i32
  }
  func.func @transform_5(%arg0: i32) -> (i32, i32) {
    %c0_i32 = arith.constant 0 : i32
    %c0_i32_0 = arith.constant 0 : i32
    %c0_i32_1 = arith.constant 0 : i32
    return %c0_i32, %c0_i32_0 : i32, i32
  }
  func.func @transform_6(%arg0: i32) -> (i32, i32, i32) {
    %c0_i32 = arith.constant 0 : i32
    %c0_i32_0 = arith.constant 0 : i32
    %c0_i32_1 = arith.constant 0 : i32
    %c0_i32_2 = arith.constant 0 : i32
    return %c0_i32, %c0_i32_0, %c0_i32_1 : i32, i32, i32
  }
}

</mosaic_0001>

<bundles_post_ra>
// kernel: rnn_forward.1
= control target key start
LH: loop header
LB: loop body
LE: loop exit
PB: predicated region body
PF: predicated region fallthrough
CT: control target
= control target key end

     0   :  { %11 = vsyncpa [#allocation4], 0  ;;  %s2457_s0 = inlined_call_operand.hbm [shape: f32[4,8,28], index: 0, kind: input, shape index: {}]   ;;  %s2458_s1 = inlined_call_operand.vmem [shape: f32[28,256], index: 1, kind: input, shape index: {}]   ;;  %s2459_s2 = inlined_call_operand.hbm [shape: f32[64,256], index: 2, kind: input, shape index: {}]   ;;  %s2460_s3 = inlined_call_operand.vmem [shape: f32[1,256], index: 3, kind: input, shape index: {}]   ;;  %s2461_s4 = inlined_call_operand.vmem [shape: f32[64,10], index: 4, kind: input, shape index: {}]   ;;  %s2462_s5 = inlined_call_operand.vmem [shape: f32[1,10], index: 5, kind: input, shape index: {}]   ;;  %s2463_s6 = inlined_call_operand.hbm [shape: f32[3,8,10], index: 6, kind: output, shape index: {}]  }
   0x1   :  { %12 = vsyncpa [#allocation7], 0 }
   0x2   :  { %13 = vsyncpa [#allocation5], 0  ;;  %s18_s23 = sshll.u32 %s2457_s0, 4  ;;  %s1828_s24 = smov [#allocation3]   ;;  %s19_s23 = int_to_ptr.hbm [resolvable:$true] %s18_s23 }
   0x3   :  { %s20_s25 = sshll.u32 %s1828_s24, 4  ;;  %s33_s28 = sshll.u32 %s2459_s2, 4  ;;  %s21_s25 = int_to_ptr.vmem [resolvable:$true] %s20_s25  ;;  %s34_s28 = int_to_ptr.hbm [resolvable:$true] %s33_s28 }
   0x4   :  { %s1829_s29 = smov 128   ;;  %s1830_s30 = smov 8  }
   0x5   :  { %26 = dma.hbm_to_vmem [thread:$0]  %s19_s23, 512, %s21_s25, [#allocation4], %s1829_s29, %s1829_s29, %s1830_s30  }
   0x6   :  { %s1831_s7 = smov [#allocation6]   ;;  %s1832_s9 = smov 256  }
   0x7   :  { %s35_s8 = sshll.u32 %s1831_s7, 4  ;;  %s1833_s0 = smov 16   ;;  %s36_s8 = int_to_ptr.vmem [resolvable:$true] %s35_s8 }
   0x8   :  { %41 = dma.hbm_to_vmem [thread:$0]  %s34_s28, 2048, %s36_s8, [#allocation7], %s1832_s9, %s1832_s9, %s1833_s0  }
   0x9   :  { %1822 = dma.done.wait [#allocation4], 512  }
   0xa   :  { %1823 = vsyncadd [#allocation4], 4294966784 }
   0xb   :  { %1824 = dma.done.wait [#allocation7], 2048  }
   0xc   :  { %1825 = vsyncadd [#allocation7], 4294965248  ;;  %vm87_vm0 = vcmask 1043456   ;;  %v66_v0 = vld [vmem:[%s2458_s1 + $0x30] sm:$0xf]  ;;  %v64_v2 = vld [vmem:[%s2458_s1 + $0x20] sm:$0xff] }
   0xd   :  { %v67_v1 = vld [vmem:[%s2458_s1 + $0x38] sm:$0xf]  ;;  %1594 = vmatpush.msk.msra.mxu0 %vm87_vm0, %v66_v0  ;;  %v65_v3 = vld [vmem:[%s2458_s1 + $0x28] sm:$0xff]  ;;  %v62_v4 = vld [vmem:[%s2458_s1 + $0x10] sm:$0xff]  ;;  %vm74_vm1 = vcmask 228352   ;;  %v1834_v26 = vmov 0.0  }
   0xe   :  { %1599 = vmatpush.msk.msra.mxu1 %vm87_vm0, %v67_v1  ;;  %v63_v5 = vld [vmem:[%s2458_s1 + $0x18] sm:$0xff]  ;;  %v60_v6 = vld [vmem:[%s2458_s1] sm:$0xff]  ;;  %v61_v9 = vld [vmem:[%s2458_s1 + $0x8] sm:$0xff]  ;;  %vm169_vm2 = vcmask 1041409   ;;  %vm171_vm3 = vcmask 1045509   ;;  %vm174_vm4 = vcmask 1042434  }
   0xf   :  { %107 = vmatpush.msra.mxu0 %v64_v2  ;;  %v1904_v7 = vld [vmem:[#allocation6 + $0x78] sm:$0xff]  ;;  %v1906_v8 = vld [vmem:[#allocation6 + $0x70] sm:$0xff]  ;;  %v1913_v10 = vld [vmem:[#allocation6 + $0x68] sm:$0xff]  ;;  %vm176_vm5 = vcmask 1046534   ;;  %vm179_vm6 = vcmask 1043459   ;;  %vm181_vm7 = vcmask 1047559  }
  0x10   :  { %136 = vmatpush.msra.mxu1 %v65_v3  ;;  %391 = vmatpush.msra.mxu3 %v1904_v7  ;;  %v1915_v11 = vld [vmem:[#allocation6 + $0x60] sm:$0xff]  ;;  %v1919_v13 = vld [vmem:[#allocation6 + $0x58] sm:$0xff]  ;;  %v1921_v14 = vld [vmem:[#allocation6 + $0x50] sm:$0xff]  ;;  %s1580_s24 = sshll.u32 %s2463_s6, 4  ;;  %s1581_s24 = int_to_ptr.hbm [resolvable:$true] %s1580_s24 }
  0x11   :  { %371 = vmatpush.msra.mxu2 %v1906_v8  ;;  %108 = vmatpush.msra.mxu0 %v62_v4  ;;  %v56_v12 = vld [vmem:[#allocation3] sm:$0xff]  ;;  %v1925_v15 = vld [vmem:[#allocation6 + $0x48] sm:$0xff]  ;;  %v1931_v17 = vld [vmem:[#allocation6 + $0x38] sm:$0xff] }
  0x12   :  { %137 = vmatpush.msra.mxu1 %v63_v5  ;;  %392 = vmatpush.msra.mxu3 %v1913_v10  ;;  %v1927_v16 = vld [vmem:[#allocation6 + $0x40] sm:$0xff]  ;;  %v1933_v18 = vld [vmem:[#allocation6 + $0x30] sm:$0xff]  ;;  %v1938_v19 = vld [vmem:[#allocation6 + $0x28] sm:$0xff] }
  0x13   :  { %372 = vmatpush.msra.mxu2 %v1915_v11  ;;  %109 = vmatpush.msra.mxu0 %v60_v6  ;;  %v1940_v20 = vld [vmem:[#allocation6 + $0x20] sm:$0xff]  ;;  %v57_v21 = vld [vmem:[#allocation3 + $0x8] sm:$0xff]  ;;  %v1945_v22 = vld [vmem:[#allocation6 + $0x18] sm:$0xff] }
  0x14   :  { %138 = vmatpush.msra.mxu1 %v61_v9  ;;  %1595 = vmatmul.msk.f32.vlgmr.msra.gmra.mxu0 %vm74_vm1, %v56_v12  ;;  %v1947_v23 = vld [vmem:[#allocation6 + $0x10] sm:$0xff]  ;;  %v1954_v24 = vld [vmem:[#allocation6 + $0x8] sm:$0xff]  ;;  %v1956_v25 = vld [vmem:[#allocation6] sm:$0xff] }
  0x15   :  { %1600 = vmatmul.msk.f32.vlgmr.msra.gmra.mxu1 %vm74_vm1, %v56_v12  ;;  %393 = vmatpush.msra.mxu3 %v1919_v13  ;;  %v58_v27 = vld [vmem:[#allocation3 + $0x10] sm:$0xff]  ;;  %v59_v28 = vld [vmem:[#allocation3 + $0x18] sm:$0xff] }
  0x16   :  { %373 = vmatpush.msra.mxu2 %v1921_v14  ;;  %548 = vmatpush.msrb.mxu0 %v1904_v7  ;;  %v68_v29 = vld [vmem:[%s2460_s3] sm:$0x3]  ;;  %s1835_s3 = smov 64  }
  0x17   :  { %394 = vmatpush.msra.mxu3 %v1925_v15  ;;  %v1990_v30 = vperm.slane %v68_v29, 0  ;;  %v1992_v31 = vperm.slane %v68_v29, 1 }
  0x18   :  { %374 = vmatpush.msra.mxu2 %v1927_v16  ;;  %549 = vmatpush.msrb.mxu0 %v1913_v10 }
  0x19   :  { %395 = vmatpush.msra.mxu3 %v1931_v17 }
  0x1a   :  { %375 = vmatpush.msra.mxu2 %v1933_v18  ;;  %550 = vmatpush.msrb.mxu0 %v1919_v13 }
  0x1b   :  { %396 = vmatpush.msra.mxu3 %v1938_v19 }
  0x1c   :  { %376 = vmatpush.msra.mxu2 %v1940_v20  ;;  %1596 = vmatmul.msk.f32.gmra.mxu0 %vm74_vm1, %v57_v21 }
  0x1d   :  { %1601 = vmatmul.msk.f32.gmra.mxu1 %vm74_vm1, %v57_v21  ;;  %397 = vmatpush.msra.mxu3 %v1945_v22 }
  0x1e   :  { %377 = vmatpush.msra.mxu2 %v1947_v23  ;;  %551 = vmatpush.msrb.mxu0 %v1925_v15 }
  0x1f   :  { %398 = vmatpush.msra.mxu3 %v1954_v24 }
  0x20   :  { %378 = vmatpush.msra.mxu2 %v1956_v25  ;;  %399 = vmatmul.f32.vlgmr.msra.gmra.mxu3 %v1834_v26 }
  0x21   :  { %379 = vmatmul.f32.vlgmr.msra.gmra.mxu2 %v1834_v26  ;;  %528 = vmatpush.msrb.mxu3 %v1906_v8 }
  0x22   :  { %552 = vmatpush.msrb.mxu0 %v1931_v17 }
  0x23   :  { %529 = vmatpush.msrb.mxu3 %v1915_v11 }
  0x24   :  { %553 = vmatpush.msrb.mxu0 %v1938_v19 }
  0x25   :  { %1597 = vmatmul.msk.f32.gmra.mxu0 %vm74_vm1, %v58_v27  ;;  %1602 = vmatmul.msk.f32.gmra.mxu1 %vm74_vm1, %v58_v27 }
  0x26   :  { %530 = vmatpush.msrb.mxu3 %v1921_v14  ;;  %554 = vmatpush.msrb.mxu0 %v1945_v22 }
  0x28   :  { %531 = vmatpush.msrb.mxu3 %v1927_v16  ;;  %555 = vmatpush.msrb.mxu0 %v1954_v24 }
  0x2a   :  { %532 = vmatpush.msrb.mxu3 %v1933_v18 }
  0x2c   :  { %533 = vmatpush.msrb.mxu3 %v1940_v20 }
  0x2d   :  { %1598 = vmatmul.msk.f32.gmra.mxu0 %vm74_vm1, %v59_v28  ;;  %1603 = vmatmul.msk.f32.gmra.mxu1 %vm74_vm1, %v59_v28  ;;  %vm359_vm1 = vcmask 523264  }
  0x2e   :  { %534 = vmatpush.msrb.mxu3 %v1947_v23 }
  0x30   :  { %535 = vmatpush.msrb.mxu3 %v1956_v25 }
  0x32   :  { %701 = vmatpush.msra.mxu3 %v1904_v7 }
  0x34   :  { %702 = vmatpush.msra.mxu3 %v1913_v10 }
  0x36   :  { %703 = vmatpush.msra.mxu3 %v1919_v13 }
  0x38   :  { %704 = vmatpush.msra.mxu3 %v1925_v15 }
  0x3a   :  { %705 = vmatpush.msra.mxu3 %v1931_v17 }
  0x3c   :  { %706 = vmatpush.msra.mxu3 %v1938_v19 }
  0x3e   :  { %707 = vmatpush.msra.mxu3 %v1945_v22 }
  0x40   :  { %708 = vmatpush.msra.mxu3 %v1954_v24 }
  0x91   :  { %v111_v32 = vpop.f32.mrf.mxu0 }
  0x92   :  { %v140_v33 = vpop.f32.mrf.mxu1  ;;  %v1995_v34 = vadd.f32 %v111_v32, %v1990_v30 }
  0x93   :  { %v1998_v35 = vadd.f32 %v140_v33, %v1992_v31 }
  0x94   :  { %221 = vst.sshfl [vmem:[#allocation1] sm:$0xff pattern:$0x75316420] %v1995_v34 }
  0x95   :  { %222 = vst.sshfl [vmem:[#allocation1 + $0x8] sm:$0xff pattern:$0x75316420] %v1998_v35  ;;  %v160_v36 = vrot.slane %v1998_v35, 4 }
  0x97   :  { %v164_v39 = vsel %vm87_vm0, %v1995_v34, %v160_v36 }
  0x98   :  { %v185_v44 = vrot.slane %v164_v39, 1  ;;  %v197_v46 = vrot.slane %v164_v39, 2  ;;  %v209_v49 = vrot.slane %v164_v39, 3 }
  0x99   :  { %v114_v37 = vpop.f32.mrf.mxu0 }
  0x9a   :  { %v143_v38 = vpop.f32.mrf.mxu1  ;;  %v2006_v40 = vadd.f32 %v114_v37, %v1990_v30 }
  0x9b   :  { %v2009_v41 = vadd.f32 %v143_v38, %v1992_v31 }
  0x9c   :  { %v224_v42 = vld [vmem:[#allocation1 + $0x1] ss:$2 sm:$0xff]  ;;  %225 = vst.sshfl [vmem:[#allocation1 + $0x10] sm:$0xff pattern:$0x75316420] %v2006_v40 }
  0x9d   :  { %v161_v43 = vrot.slane %v2009_v41, 4  ;;  %249 = vst.sshfl [vmem:[#allocation1] sm:$0xff pattern:$0x75316420] %v1995_v34 }
  0x9e   :  { %250 = vst.sshfl [vmem:[#allocation1 + $0x8] sm:$0xff pattern:$0x75316420] %v1998_v35 }
  0x9f   :  { %v165_v45 = vsel %vm87_vm0, %v2006_v40, %v161_v43  ;;  %226 = vst.sshfl [vmem:[#allocation1 + $0x18] sm:$0xff pattern:$0x75316420] %v2009_v41 }
  0xa0   :  { %v186_v47 = vsel %vm169_vm2, %v165_v45, %v185_v44  ;;  %v198_v48 = vrot.slane %v165_v45, 1  ;;  %v210_v50 = vrot.slane %v165_v45, 2  ;;  %v168_v62 = vrot.slane %v165_v45, 7 }
  0xa1   :  { %v187_v51 = vsel %vm171_vm3, %v165_v45, %v186_v47 }
  0xa2   :  { %v117_v52 = vpop.f32.mrf.mxu0  ;;  %v146_v53 = vpop.f32.mrf.mxu1  ;;  %v199_v54 = vsel %vm169_vm2, %v198_v48, %v197_v46  ;;  %v211_v55 = vsel %vm169_vm2, %v210_v50, %v209_v49  ;;  %v170_v21 = vsel %vm169_vm2, %v168_v62, %v164_v39 }
  0xa3   :  { %v2023_v56 = vadd.f32 %v117_v52, %v1990_v30  ;;  %v2026_v57 = vadd.f32 %v146_v53, %v1992_v31  ;;  %v200_v58 = vsel %vm171_vm3, %v198_v48, %v199_v54  ;;  %v212_v59 = vsel %vm171_vm3, %v210_v50, %v211_v55  ;;  %v400_v1 = vpop.f32.mrf.mxu3 }
  0xa4   :  { %v405_v33 = vrot.slane %v400_v1, 4  ;;  %v380_v37 = vpop.f32.mrf.mxu2 }
  0xa5   :  { %229 = vst.sshfl [vmem:[#allocation1 + $0x20] sm:$0xff pattern:$0x75316420] %v2023_v56  ;;  %v162_v60 = vrot.slane %v2026_v57, 4  ;;  %v2032_v61 = vld [vmem:[#allocation1 + $0x1] ss:$2 sm:$0xff] }
  0xa6   :  { %230 = vst.sshfl [vmem:[#allocation1 + $0x28] sm:$0xff pattern:$0x75316420] %v2026_v57  ;;  %v228_v63 = vld [vmem:[#allocation1 + $0x11] ss:$2 sm:$0xff]  ;;  %v406_v48 = vsel %vm87_vm0, %v380_v37, %v405_v33 }
  0xa7   :  { %277 = vst.sshfl [vmem:[#allocation1] sm:$0xff pattern:$0x75316420] %v1995_v34  ;;  %v166_v0 = vsel %vm87_vm0, %v2023_v56, %v162_v60  ;;  %v237_v6 = vrot.slane %v228_v63, 7 }
  0xa8   :  { %278 = vst.sshfl [vmem:[#allocation1 + $0x8] sm:$0xff pattern:$0x75316420] %v1998_v35  ;;  %v188_v2 = vrot.slane %v166_v0, 7  ;;  %v201_v3 = vsel %vm174_vm4, %v166_v0, %v200_v58  ;;  %v213_v4 = vrot.slane %v166_v0, 1  ;;  %v173_v26 = vrot.slane %v166_v0, 6 }
  0xa9   :  { %253 = vst.sshfl [vmem:[#allocation1 + $0x10] sm:$0xff pattern:$0x75316420] %v2006_v40  ;;  %v202_v5 = vsel %vm176_vm5, %v166_v0, %v201_v3  ;;  %v238_v39 = vsel %vm169_vm2, %v237_v6, %v224_v42 }
  0xaa   :  { %254 = vst.sshfl [vmem:[#allocation1 + $0x18] sm:$0xff pattern:$0x75316420] %v2009_v41  ;;  %v120_v9 = vpop.f32.mrf.mxu0  ;;  %v149_v12 = vpop.f32.mrf.mxu1  ;;  %v189_v27 = vsel %vm174_vm4, %v188_v2, %v187_v51  ;;  %v214_v28 = vsel %vm174_vm4, %v213_v4, %v212_v59  ;;  %v239_v45 = vsel %vm171_vm3, %v237_v6, %v238_v39  ;;  %v265_v59 = vrot.slane %v2032_v61, 1 }
  0xab   :  { %v2047_v29 = vadd.f32 %v120_v9, %v1990_v30  ;;  %v2050_v32 = vadd.f32 %v149_v12, %v1992_v31  ;;  %v190_v36 = vsel %vm176_vm5, %v188_v2, %v189_v27  ;;  %v215_v38 = vsel %vm176_vm5, %v213_v4, %v214_v28 }
  0xac   :  { %v172_v30 = vsel %vm171_vm3, %v168_v62, %v170_v21 }
  0xad   :  { %v232_v43 = vld [vmem:[#allocation1 + $0x21] ss:$2 sm:$0xff]  ;;  %233 = vst.sshfl [vmem:[#allocation1 + $0x30] sm:$0xff pattern:$0x75316420] %v2047_v29  ;;  %v163_v44 = vrot.slane %v2050_v32, 4  ;;  %v175_v31 = vsel %vm174_vm4, %v173_v26, %v172_v30 }
  0xae   :  { %257 = vst.sshfl [vmem:[#allocation1 + $0x20] sm:$0xff pattern:$0x75316420] %v2023_v56  ;;  %v240_v46 = vrot.slane %v232_v43, 6  ;;  %v177_v54 = vsel %vm176_vm5, %v173_v26, %v175_v31 }
  0xaf   :  { %v280_v47 = vld [vmem:[#allocation1 + $0x1] ss:$2 sm:$0xff]  ;;  %258 = vst.sshfl [vmem:[#allocation1 + $0x28] sm:$0xff pattern:$0x75316420] %v2026_v57  ;;  %v167_v42 = vsel %vm87_vm0, %v2047_v29, %v163_v44 }
  0xb0   :  { %305 = vst.sshfl [vmem:[#allocation1] sm:$0xff pattern:$0x75316420] %v1995_v34  ;;  %v178_v49 = vrot.slane %v167_v42, 5  ;;  %v191_v50 = vrot.slane %v167_v42, 6  ;;  %v203_v51 = vrot.slane %v167_v42, 7  ;;  %v216_v52 = vsel %vm179_vm6, %v167_v42, %v215_v38 }
  0xb1   :  { %306 = vst.sshfl [vmem:[#allocation1 + $0x8] sm:$0xff pattern:$0x75316420] %v1998_v35  ;;  %v256_v53 = vld [vmem:[#allocation1 + $0x11] ss:$2 sm:$0xff]  ;;  %v2070_v55 = vsel %vm181_vm7, %v167_v42, %v216_v52  ;;  %v241_v58 = vsel %vm174_vm4, %v240_v46, %v239_v45  ;;  %v293_v26 = vrot.slane %v280_v47, 2 }
  0xb2   :  { %281 = vst.sshfl [vmem:[#allocation1 + $0x10] sm:$0xff pattern:$0x75316420] %v2006_v40  ;;  %v180_v34 = vsel %vm179_vm6, %v178_v49, %v177_v54  ;;  %v192_v60 = vsel %vm179_vm6, %v191_v50, %v190_v36  ;;  %v204_v62 = vsel %vm179_vm6, %v203_v51, %v202_v5  ;;  %v242_v35 = vsel %vm176_vm5, %v240_v46, %v241_v58 }
  0xb3   :  { %282 = vst.sshfl [vmem:[#allocation1 + $0x18] sm:$0xff pattern:$0x75316420] %v2009_v41  ;;  %v182_v63 = vsel %vm181_vm7, %v178_v49, %v180_v34  ;;  %v2082_v0 = vsel %vm181_vm7, %v191_v50, %v192_v60  ;;  %v2085_v1 = vsel %vm181_vm7, %v203_v51, %v204_v62  ;;  %v266_v61 = vsel %vm169_vm2, %v256_v53, %v265_v59 }
  0xb4   :  { %234 = vst.sshfl [vmem:[#allocation1 + $0x38] sm:$0xff pattern:$0x75316420] %v2050_v32  ;;  %v2089_v2 = vadd.f32 %v406_v48, %v182_v63  ;;  %v267_v3 = vsel %vm171_vm3, %v256_v53, %v266_v61 }
  0xb6   :  { %v260_v4 = vld [vmem:[#allocation1 + $0x21] ss:$2 sm:$0xff]  ;;  %v1604_v5 = vmul.f32 -1.442695, %v2089_v2 }
  0xb7   :  { %285 = vst.sshfl [vmem:[#allocation1 + $0x20] sm:$0xff pattern:$0x75316420] %v2023_v56  ;;  %v268_v6 = vrot.slane %v260_v4, 7 }
  0xb8   :  { %286 = vst.sshfl [vmem:[#allocation1 + $0x28] sm:$0xff pattern:$0x75316420] %v2026_v57  ;;  %1652 = vpow2.f32 %v1604_v5 }
  0xb9   :  { %v269_v9 = vsel %vm174_vm4, %v268_v6, %v267_v3 }
  0xba   :  { %v284_v12 = vld [vmem:[#allocation1 + $0x11] ss:$2 sm:$0xff]  ;;  %v270_v21 = vsel %vm176_vm5, %v268_v6, %v269_v9 }
  0xbb   :  { %309 = vst.sshfl [vmem:[#allocation1 + $0x10] sm:$0xff pattern:$0x75316420] %v2006_v40  ;;  %v236_v27 = vld [vmem:[#allocation1 + $0x31] ss:$2 sm:$0xff]  ;;  %v294_v28 = vrot.slane %v284_v12, 1 }
  0xbc   :  { %310 = vst.sshfl [vmem:[#allocation1 + $0x18] sm:$0xff pattern:$0x75316420] %v2009_v41  ;;  %v243_v33 = vrot.slane %v236_v27, 5  ;;  %v308_v41 = vld [vmem:[#allocation1 + $0x1] ss:$2 sm:$0xff] }
  0xbd   :  { %261 = vst.sshfl [vmem:[#allocation1 + $0x30] sm:$0xff pattern:$0x75316420] %v2047_v29  ;;  %v295_v36 = vsel %vm169_vm2, %v294_v28, %v293_v26  ;;  %v321_v46 = vrot.slane %v308_v41, 3 }
  0xbe   :  { %v1653_v37 = vpop.eup %1652  ;;  %262 = vst.sshfl [vmem:[#allocation1 + $0x38] sm:$0xff pattern:$0x75316420] %v2050_v32  ;;  %v244_v38 = vsel %vm179_vm6, %v243_v33, %v242_v35  ;;  %v296_v39 = vsel %vm171_vm3, %v294_v28, %v295_v36  ;;  %v2143_v36 = vld [vmem:[%s2461_s4 + $0x30] sm:$0xff] }
  0xbf   :  { %v412_v43 = vadd.f32 1.0, %v1653_v37  ;;  %v2105_v44 = vsel %vm181_vm7, %v243_v33, %v244_v38  ;;  %v288_v40 = vld [vmem:[#allocation1 + $0x21] ss:$2 sm:$0xff]  ;;  %v2166_v38 = vld [vmem:[%s2461_s4 + $0x18] sm:$0xff] }
  0xc0   :  { %v297_v30 = vsel %vm174_vm4, %v288_v40, %v296_v39  ;;  %313 = vst.sshfl [vmem:[#allocation1 + $0x20] sm:$0xff pattern:$0x75316420] %v2023_v56  ;;  %v429_v56 = vrot.slane %v2089_v2, 4  ;;  %v2150_v37 = vld [vmem:[%s2461_s4 + $0x28] sm:$0xff]  ;;  %v2174_v39 = vld [vmem:[%s2461_s4 + $0x10] sm:$0xff] }
  0xc1   :  { %1654 = vrcp.f32 %v412_v43  ;;  %314 = vst.sshfl [vmem:[#allocation1 + $0x28] sm:$0xff pattern:$0x75316420] %v2026_v57  ;;  %v298_v45 = vsel %vm176_vm5, %v288_v40, %v297_v30  ;;  %v424_v34 = vand.u32 2147483648, %v412_v43  ;;  %v422_v35 = vand.u32 2147483647, %v412_v43 }
  0xc2   :  { %1656 = vtanh.f32 %v429_v56  ;;  %vm418_vm9 = vweird.f32 %v412_v43  ;;  %v2182_v30 = vld [vmem:[%s2461_s4 + $0x8] sm:$0xff] }
  0xc3   :  { %v312_v31 = vld [vmem:[#allocation1 + $0x11] ss:$2 sm:$0xff]  ;;  %v425_v4 = vor.u32 1.1754944e-38, %v424_v34  ;;  %vm423_vm11 = vcmp.eq.f32.partialorder %v422_v35, 8.507059e+37 }
  0xc4   :  { %v322_v47 = vrot.slane %v312_v31, 2 }
  0xc5   :  { %v264_v42 = vld [vmem:[#allocation1 + $0x31] ss:$2 sm:$0xff] }
  0xc6   :  { %289 = vst.sshfl [vmem:[#allocation1 + $0x30] sm:$0xff pattern:$0x75316420] %v2047_v29  ;;  %v271_v48 = vrot.slane %v264_v42, 6  ;;  %v323_v49 = vsel %vm169_vm2, %v322_v47, %v321_v46  ;;  %vm499_vm2 = vcmask 73728  }
  0xc7   :  { %v1655_v50 = vpop.eup %1654  ;;  %290 = vst.sshfl [vmem:[#allocation1 + $0x38] sm:$0xff pattern:$0x75316420] %v2050_v32  ;;  %v324_v51 = vsel %vm171_vm3, %v322_v47, %v323_v49  ;;  %v2198_v49 = vld [vmem:[%s2461_s4] sm:$0xff] }
  0xc8   :  { %v414_v57 = vmul.f32 %v1655_v50, %v412_v43  ;;  %v272_v52 = vsel %vm179_vm6, %v271_v48, %v270_v21  ;;  %v316_v53 = vld [vmem:[#allocation1 + $0x21] ss:$2 sm:$0xff]  ;;  %vm419_vm8 = vweird.f32 %v1655_v50  ;;  %v1657_v9 = vpop.eup %1656 }
  0xc9   :  { %v2118_v54 = vsel %vm181_vm7, %v271_v48, %v272_v52  ;;  %v325_v58 = vrot.slane %v316_v53, 1  ;;  %vm420_vm10 = vmor %vm418_vm9, %vm419_vm8 }
  0xca   :  { %v415_v59 = vsub.f32 1.0, %v414_v57 }
  0xcb   :  { %v326_v60 = vsel %vm174_vm4, %v325_v58, %v324_v51 }
  0xcc   :  { %v416_v62 = vmul.f32 %v1655_v50, %v415_v59  ;;  %v327_v63 = vsel %vm176_vm5, %v325_v58, %v326_v60 }
  0xce   :  { %v417_v61 = vadd.f32 %v1655_v50, %v416_v62  ;;  %v292_v3 = vld [vmem:[#allocation1 + $0x31] ss:$2 sm:$0xff] }
  0xcf   :  { %v299_v5 = vrot.slane %v292_v3, 7  ;;  %317 = vst.sshfl [vmem:[#allocation1 + $0x30] sm:$0xff pattern:$0x75316420] %v2047_v29 }
  0xd0   :  { %v421_v6 = vsel %vm420_vm10, %v1655_v50, %v417_v61  ;;  %318 = vst.sshfl [vmem:[#allocation1 + $0x38] sm:$0xff pattern:$0x75316420] %v2050_v32  ;;  %v2138_v32 = vld [vmem:[%s2461_s4 + $0x38] sm:$0xff] }
  0xd1   :  { %v426_v12 = vsel %vm423_vm11, %v425_v4, %v421_v6  ;;  %v300_v21 = vsel %vm179_vm6, %v299_v5, %v298_v45  ;;  %482 = vmatpush.msrb.mxu2 %v2138_v32  ;;  %636 = vmatpush.msrb.mxu1 %v2138_v32 }
  0xd2   :  { %v456_v26 = vmul.f32 %v1657_v9, %v426_v12  ;;  %v2126_v27 = vsel %vm181_vm7, %v299_v5, %v300_v21  ;;  %789 = vmatpush.msra.mxu0 %v2138_v32  ;;  %v455_v43 = vmul.f32 0.0, %v426_v12 }
  0xd3   :  { %483 = vmatpush.msrb.mxu2 %v2143_v36  ;;  %637 = vmatpush.msrb.mxu1 %v2143_v36 }
  0xd4   :  { %458 = vrot.lane.b32.xlu0 %v456_v26, %s1835_s3  ;;  %790 = vmatpush.msra.mxu0 %v2143_v36 }
  0xd5   :  { %484 = vmatpush.msrb.mxu2 %v2150_v37  ;;  %638 = vmatpush.msrb.mxu1 %v2150_v37 }
  0xd6   :  { %791 = vmatpush.msra.mxu0 %v2150_v37 }
  0xd7   :  { %v320_v28 = vld [vmem:[#allocation1 + $0x31] ss:$2 sm:$0xff] }
  0xd8   :  { %v328_v33 = vsel %vm179_vm6, %v320_v28, %v327_v63 }
  0xd9   :  { %v2131_v29 = vsel %vm181_vm7, %v320_v28, %v328_v33 }
  0xdc   :  { %432 = vrot.lane.b32.xlu0 %v2089_v2, %s1835_s3  ;;  %v2158_v2 = vld [vmem:[%s2461_s4 + $0x20] sm:$0xff] }
  0xdd   :  { %485 = vmatpush.msrb.mxu2 %v2158_v2  ;;  %639 = vmatpush.msrb.mxu1 %v2158_v2 }
  0xde   :  { %792 = vmatpush.msra.mxu0 %v2158_v2 }
  0xdf   :  { %486 = vmatpush.msrb.mxu2 %v2166_v38  ;;  %640 = vmatpush.msrb.mxu1 %v2166_v38 }
  0xe0   :  { %793 = vmatpush.msra.mxu0 %v2166_v38 }
  0xe1   :  { %487 = vmatpush.msrb.mxu2 %v2174_v39  ;;  %641 = vmatpush.msrb.mxu1 %v2174_v39 }
  0xe2   :  { %794 = vmatpush.msra.mxu0 %v2174_v39 }
  0xe3   :  { %488 = vmatpush.msrb.mxu2 %v2182_v30  ;;  %642 = vmatpush.msrb.mxu1 %v2182_v30 }
  0xe4   :  { %795 = vmatpush.msra.mxu0 %v2182_v30 }
  0xe5   :  { %489 = vmatpush.msrb.mxu2 %v2198_v49  ;;  %643 = vmatpush.msrb.mxu1 %v2198_v49 }
  0xe6   :  { %796 = vmatpush.msra.mxu0 %v2198_v49 }
  0xe7   :  { %681 = vmatpush.msra.mxu2 %v1906_v8  ;;  %834 = vmatpush.msra.mxu1 %v1906_v8 }
  0xe9   :  { %682 = vmatpush.msra.mxu2 %v1915_v11  ;;  %835 = vmatpush.msra.mxu1 %v1915_v11 }
  0xeb   :  { %683 = vmatpush.msra.mxu2 %v1921_v14  ;;  %836 = vmatpush.msra.mxu1 %v1921_v14 }
  0xed   :  { %684 = vmatpush.msra.mxu2 %v1927_v16  ;;  %837 = vmatpush.msra.mxu1 %v1927_v16 }
  0xef   :  { %685 = vmatpush.msra.mxu2 %v1933_v18  ;;  %838 = vmatpush.msra.mxu1 %v1933_v18 }
  0xf1   :  { %686 = vmatpush.msra.mxu2 %v1940_v20  ;;  %839 = vmatpush.msra.mxu1 %v1940_v20 }
  0xf3   :  { %687 = vmatpush.msra.mxu2 %v1947_v23  ;;  %840 = vmatpush.msra.mxu1 %v1947_v23 }
  0xf5   :  { %688 = vmatpush.msra.mxu2 %v1956_v25  ;;  %841 = vmatpush.msra.mxu1 %v1956_v25 }
 0x146   :  { %v459_v40 = vpop.permute.xlu0 %458 }
 0x147   :  { %v2185_v41 = vadd.f32 %v459_v40, %v455_v43 }
 0x149   :  { %1658 = vtanh.f32 %v2185_v41 }
 0x14e   :  { %v433_v31 = vpop.permute.xlu0 %432 }
 0x14f   :  { %v1659_v45 = vpop.eup %1658  ;;  %v434_v46 = vrot.slane %v433_v31, 4 }
 0x150   :  { %464 = vrot.lane.b32.xlu1 %v1659_v45, %s1835_s3 }
 0x151   :  { %v1605_v47 = vmul.f32 -1.442695, %v434_v46 }
 0x153   :  { %1660 = vpow2.f32 %v1605_v47 }
 0x159   :  { %v1661_v42 = vpop.eup %1660 }
 0x15a   :  { %v439_v48 = vadd.f32 1.0, %v1661_v42 }
 0x15c   :  { %1662 = vrcp.f32 %v439_v48  ;;  %v451_v53 = vand.u32 2147483648, %v439_v48  ;;  %vm445_vm13 = vweird.f32 %v439_v48  ;;  %v449_v58 = vand.u32 2147483647, %v439_v48 }
 0x15e   :  { %v452_v34 = vor.u32 1.1754944e-38, %v451_v53  ;;  %vm450_vm15 = vcmp.eq.f32.partialorder %v449_v58, 8.507059e+37 }
 0x162   :  { %v1663_v50 = vpop.eup %1662 }
 0x163   :  { %v441_v56 = vmul.f32 %v1663_v50, %v439_v48  ;;  %vm446_vm12 = vweird.f32 %v1663_v50 }
 0x164   :  { %vm447_vm14 = vmor %vm445_vm13, %vm446_vm12 }
 0x165   :  { %v442_v51 = vsub.f32 1.0, %v441_v56 }
 0x167   :  { %v443_v57 = vmul.f32 %v1663_v50, %v442_v51 }
 0x169   :  { %v444_v52 = vadd.f32 %v1663_v50, %v443_v57 }
 0x16b   :  { %v448_v59 = vsel %vm447_vm14, %v1663_v50, %v444_v52 }
 0x16c   :  { %v453_v60 = vsel %vm450_vm15, %v452_v34, %v448_v59 }
 0x1c2   :  { %v465_v62 = vpop.permute.xlu1 %464 }
 0x1c3   :  { %v467_v35 = vmul.f32 %v465_v62, %v453_v60 }
 0x1c5   :  { %1606 = vmatmul.msk.f32.vlgmr.msrb.gmra.mxu2 %vm359_vm1, %v467_v35  ;;  %1607 = vmatmul.msk.f32.vlgmr.msrb.gmra.mxu3 %vm359_vm1, %v467_v35 }
 0x1c6   :  { %1608 = vmatmul.msk.f32.vlgmr.msrb.gmra.mxu0 %vm359_vm1, %v467_v35  ;;  %854 = vmatpush.msrb.mxu2 %v1904_v7 }
 0x1c7   :  { %942 = vmatpush.msrb.mxu3 %v2138_v32  ;;  %987 = vmatpush.msrb.mxu0 %v1906_v8 }
 0x1c8   :  { %855 = vmatpush.msrb.mxu2 %v1913_v10 }
 0x1c9   :  { %943 = vmatpush.msrb.mxu3 %v2143_v36  ;;  %988 = vmatpush.msrb.mxu0 %v1915_v11  ;;  %v2248_v11 = vld [vmem:[%s2462_s5] ss:$0 sm:$0xff] }
 0x1ca   :  { %856 = vmatpush.msrb.mxu2 %v1919_v13 }
 0x1cb   :  { %944 = vmatpush.msrb.mxu3 %v2150_v37  ;;  %989 = vmatpush.msrb.mxu0 %v1921_v14 }
 0x1cc   :  { %857 = vmatpush.msrb.mxu2 %v1925_v15 }
 0x1cd   :  { %945 = vmatpush.msrb.mxu3 %v2158_v2  ;;  %990 = vmatpush.msrb.mxu0 %v1927_v16 }
 0x1ce   :  { %858 = vmatpush.msrb.mxu2 %v1931_v17 }
 0x1cf   :  { %946 = vmatpush.msrb.mxu3 %v2166_v38  ;;  %991 = vmatpush.msrb.mxu0 %v1933_v18 }
 0x1d0   :  { %859 = vmatpush.msrb.mxu2 %v1938_v19 }
 0x1d1   :  { %947 = vmatpush.msrb.mxu3 %v2174_v39  ;;  %992 = vmatpush.msrb.mxu0 %v1940_v20 }
 0x1d2   :  { %860 = vmatpush.msrb.mxu2 %v1945_v22 }
 0x1d3   :  { %948 = vmatpush.msrb.mxu3 %v2182_v30  ;;  %993 = vmatpush.msrb.mxu0 %v1947_v23 }
 0x1d4   :  { %861 = vmatpush.msrb.mxu2 %v1954_v24 }
 0x1d5   :  { %949 = vmatpush.msrb.mxu3 %v2198_v49 }
 0x243   :  { %v557_v8 = vpop.f32.mrf.mxu0 }
 0x244   :  { %v562_v13 = vrot.slane %v557_v8, 4 }
 0x248   :  { %v491_v14 = vpop.f32.mrf.mxu2  ;;  %v537_v15 = vpop.f32.mrf.mxu3 }
 0x249   :  { %v492_v16 = vadd.f32 %v2248_v11, %v491_v14  ;;  %v563_v17 = vsel %vm87_vm0, %v537_v15, %v562_v13 }
 0x24a   :  { %v565_v18 = vadd.f32 %v563_v17, %v2082_v0 }
 0x24b   :  { %v495_v19 = vrot.slane %v492_v16, 1  ;;  %v496_v20 = vrot.slane %v492_v16, 2  ;;  %500 = vst.msk [vmem:[#allocation8] sm:$0x1] %vm499_vm2, %v492_v16 }
 0x24c   :  { %v1609_v22 = vmul.f32 -1.442695, %v565_v18  ;;  %589 = vrot.lane.b32.xlu2 %v565_v18, %s1835_s3  ;;  %v586_v63 = vrot.slane %v565_v18, 4 }
 0x24d   :  { %501 = vst.msk [vmem:[#allocation8 + $0x8] sm:$0x1] %vm499_vm2, %v495_v19 }
 0x24e   :  { %502 = vst.msk [vmem:[#allocation8 + $0x10] sm:$0x1] %vm499_vm2, %v496_v20  ;;  %1664 = vpow2.f32 %v1609_v22 }
 0x254   :  { %v1665_v23 = vpop.eup %1664 }
 0x255   :  { %v569_v24 = vadd.f32 1.0, %v1665_v23 }
 0x257   :  { %1666 = vrcp.f32 %v569_v24  ;;  %v581_v0 = vand.u32 2147483648, %v569_v24  ;;  %v579_v5 = vand.u32 2147483647, %v569_v24  ;;  %vm575_vm4 = vweird.f32 %v569_v24 }
 0x258   :  { %1668 = vtanh.f32 %v586_v63 }
 0x259   :  { %v582_v9 = vor.u32 1.1754944e-38, %v581_v0  ;;  %vm580_vm6 = vcmp.eq.f32.partialorder %v579_v5, 8.507059e+37 }
 0x25d   :  { %v1667_v25 = vpop.eup %1666 }
 0x25e   :  { %v571_v61 = vmul.f32 %v1667_v25, %v569_v24  ;;  %vm576_vm3 = vweird.f32 %v1667_v25  ;;  %v1669_v21 = vpop.eup %1668 }
 0x25f   :  { %vm577_vm5 = vmor %vm575_vm4, %vm576_vm3 }
 0x260   :  { %v572_v3 = vsub.f32 1.0, %v571_v61 }
 0x262   :  { %v573_v4 = vmul.f32 %v1667_v25, %v572_v3 }
 0x264   :  { %v574_v6 = vadd.f32 %v1667_v25, %v573_v4 }
 0x266   :  { %v578_v12 = vsel %vm577_vm5, %v1667_v25, %v574_v6 }
 0x267   :  { %v583_v26 = vsel %vm580_vm6, %v582_v9, %v578_v12 }
 0x268   :  { %v613_v28 = vmul.f32 %v1669_v21, %v583_v26  ;;  %v612_v33 = vmul.f32 %v583_v26, %v2185_v41 }
 0x26a   :  { %615 = vrot.lane.b32.xlu1 %v613_v28, %s1835_s3 }
 0x2a6   :  { %v590_v31 = vpop.permute.xlu2 %589 }
 0x2a7   :  { %v591_v46 = vrot.slane %v590_v31, 4 }
 0x2a9   :  { %v1610_v47 = vmul.f32 -1.442695, %v591_v46 }
 0x2dc   :  { %v616_v43 = vpop.permute.xlu1 %615 }
 0x2dd   :  { %v2259_v40 = vadd.f32 %v616_v43, %v612_v33 }
 0x2df   :  { %1670 = vtanh.f32 %v2259_v40 }
 0x2e0   :  { %1672 = vpow2.f32 %v1610_v47 }
 0x2e5   :  { %v1671_v45 = vpop.eup %1670 }
 0x2e6   :  { %621 = vrot.lane.b32.xlu2 %v1671_v45, %s1835_s3  ;;  %v1673_v42 = vpop.eup %1672 }
 0x2e7   :  { %v596_v48 = vadd.f32 1.0, %v1673_v42 }
 0x2e9   :  { %1674 = vrcp.f32 %v596_v48  ;;  %v608_v52 = vand.u32 2147483648, %v596_v48  ;;  %vm602_vm8 = vweird.f32 %v596_v48  ;;  %v606_v53 = vand.u32 2147483647, %v596_v48 }
 0x2eb   :  { %v609_v59 = vor.u32 1.1754944e-38, %v608_v52  ;;  %vm607_vm10 = vcmp.eq.f32.partialorder %v606_v53, 8.507059e+37 }
 0x2ef   :  { %v1675_v50 = vpop.eup %1674 }
 0x2f0   :  { %v598_v56 = vmul.f32 %v1675_v50, %v596_v48  ;;  %vm603_vm7 = vweird.f32 %v1675_v50 }
 0x2f1   :  { %vm604_vm9 = vmor %vm602_vm8, %vm603_vm7 }
 0x2f2   :  { %v599_v51 = vsub.f32 1.0, %v598_v56 }
 0x2f4   :  { %v600_v57 = vmul.f32 %v1675_v50, %v599_v51 }
 0x2f6   :  { %v601_v41 = vadd.f32 %v1675_v50, %v600_v57 }
 0x2f8   :  { %v605_v58 = vsel %vm604_vm9, %v1675_v50, %v601_v41 }
 0x2f9   :  { %v610_v34 = vsel %vm607_vm10, %v609_v59, %v605_v58 }
 0x340   :  { %v622_v60 = vpop.permute.xlu2 %621 }
 0x341   :  { %v624_v62 = vmul.f32 %v622_v60, %v610_v34 }
 0x343   :  { %1611 = vmatmul.msk.f32.vlgmr.msrb.gmra.mxu1 %vm359_vm1, %v624_v62  ;;  %1612 = vmatmul.msk.f32.vlgmr.msra.gmra.mxu2 %vm359_vm1, %v624_v62 }
 0x344   :  { %1613 = vmatmul.msk.f32.vlgmr.msra.gmra.mxu3 %vm359_vm1, %v624_v62  ;;  %1007 = vmatpush.msrb.mxu1 %v1904_v7 }
 0x345   :  { %1095 = vmatpush.msra.mxu2 %v2138_v32 }
 0x346   :  { %1008 = vmatpush.msrb.mxu1 %v1913_v10 }
 0x347   :  { %1096 = vmatpush.msra.mxu2 %v2143_v36 }
 0x349   :  { %1097 = vmatpush.msra.mxu2 %v2150_v37 }
 0x34b   :  { %1098 = vmatpush.msra.mxu2 %v2158_v2 }
 0x34d   :  { %1099 = vmatpush.msra.mxu2 %v2166_v38 }
 0x34f   :  { %1100 = vmatpush.msra.mxu2 %v2174_v39 }
 0x351   :  { %1101 = vmatpush.msra.mxu2 %v2182_v30 }
 0x353   :  { %1102 = vmatpush.msra.mxu2 %v2198_v49 }
 0x3c0   :  { %v645_v35 = vpop.f32.mrf.mxu1 }
 0x3c1   :  { %v646_v7 = vadd.f32 %v2248_v11, %v645_v35 }
 0x3c3   :  { %v649_v8 = vrot.slane %v646_v7, 1  ;;  %v650_v13 = vrot.slane %v646_v7, 2  ;;  %653 = vst.msk [vmem:[#allocation8 + $0x1] sm:$0x1] %vm499_vm2, %v646_v7 }
 0x3c5   :  { %654 = vst.msk [vmem:[#allocation8 + $0x9] sm:$0x1] %vm499_vm2, %v649_v8 }
 0x3c6   :  { %655 = vst.msk [vmem:[#allocation8 + $0x11] sm:$0x1] %vm499_vm2, %v650_v13  ;;  %v690_v15 = vpop.f32.mrf.mxu2 }
 0x3c7   :  { %v710_v10 = vpop.f32.mrf.mxu3 }
 0x3c8   :  { %v715_v14 = vrot.slane %v710_v10, 4 }
 0x3ca   :  { %v716_v16 = vsel %vm87_vm0, %v690_v15, %v715_v14 }
 0x3cb   :  { %v718_v17 = vadd.f32 %v716_v16, %v2085_v1 }
 0x3cd   :  { %742 = vrot.lane.b32.xlu1 %v718_v17, %s1835_s3  ;;  %v1614_v18 = vmul.f32 -1.442695, %v718_v17  ;;  %v739_v23 = vrot.slane %v718_v17, 4 }
 0x3cf   :  { %1676 = vpow2.f32 %v1614_v18 }
 0x3d5   :  { %v1677_v19 = vpop.eup %1676 }
 0x3d6   :  { %v722_v20 = vadd.f32 1.0, %v1677_v19 }
 0x3d8   :  { %1678 = vrcp.f32 %v722_v20  ;;  %v734_v63 = vand.u32 2147483648, %v722_v20  ;;  %v732_v3 = vand.u32 2147483647, %v722_v20  ;;  %vm728_vm12 = vweird.f32 %v722_v20 }
 0x3d9   :  { %1680 = vtanh.f32 %v739_v23 }
 0x3da   :  { %v735_v1 = vor.u32 1.1754944e-38, %v734_v63  ;;  %vm733_vm14 = vcmp.eq.f32.partialorder %v732_v3, 8.507059e+37 }
 0x3de   :  { %v1679_v22 = vpop.eup %1678 }
 0x3df   :  { %v724_v24 = vmul.f32 %v1679_v22, %v722_v20  ;;  %vm729_vm11 = vweird.f32 %v1679_v22  ;;  %v1681_v5 = vpop.eup %1680 }
 0x3e0   :  { %vm730_vm13 = vmor %vm728_vm12, %vm729_vm11 }
 0x3e1   :  { %v725_v25 = vsub.f32 1.0, %v724_v24 }
 0x3e3   :  { %v726_v61 = vmul.f32 %v1679_v22, %v725_v25 }
 0x3e5   :  { %v727_v0 = vadd.f32 %v1679_v22, %v726_v61 }
 0x3e7   :  { %v731_v4 = vsel %vm730_vm13, %v1679_v22, %v727_v0 }
 0x3e8   :  { %v736_v6 = vsel %vm733_vm14, %v735_v1, %v731_v4  ;;  %v2300_v1 = vld [vmem:[#allocation6 + $0x58] sm:$0xff]  ;;  %v2302_v4 = vld [vmem:[#allocation6 + $0x48] sm:$0xff] }
 0x3e9   :  { %v766_v9 = vmul.f32 %v1681_v5, %v736_v6  ;;  %v765_v12 = vmul.f32 %v736_v6, %v2259_v40  ;;  %1009 = vmatpush.msrb.mxu1 %v2300_v1  ;;  %v2306_v5 = vld [vmem:[#allocation6 + $0x28] sm:$0xff]  ;;  %v1748_v6 = vld [vmem:[#allocation6 + $0x38] sm:$0xff] }
 0x3eb   :  { %768 = vrot.lane.b32.xlu0 %v766_v9, %s1835_s3  ;;  %1010 = vmatpush.msrb.mxu1 %v2302_v4  ;;  %v2308_v9 = vld [vmem:[#allocation6 + $0x18] sm:$0xff] }
 0x3ed   :  { %1011 = vmatpush.msrb.mxu1 %v1748_v6 }
 0x3ef   :  { %1012 = vmatpush.msrb.mxu1 %v2306_v5 }
 0x3f1   :  { %1013 = vmatpush.msrb.mxu1 %v2308_v9 }
 0x43f   :  { %v743_v33 = vpop.permute.xlu1 %742 }
 0x440   :  { %v744_v43 = vrot.slane %v743_v33, 4 }
 0x442   :  { %v1615_v45 = vmul.f32 -1.442695, %v744_v43 }
 0x45d   :  { %v769_v21 = vpop.permute.xlu0 %768 }
 0x45e   :  { %v2285_v26 = vadd.f32 %v769_v21, %v765_v12 }
 0x460   :  { %1682 = vtanh.f32 %v2285_v26 }
 0x461   :  { %1684 = vpow2.f32 %v1615_v45 }
 0x466   :  { %v1683_v28 = vpop.eup %1682 }
 0x467   :  { %774 = vrot.lane.b32.xlu2 %v1683_v28, %s1835_s3  ;;  %v1685_v31 = vpop.eup %1684 }
 0x468   :  { %v749_v46 = vadd.f32 1.0, %v1685_v31 }
 0x46a   :  { %1686 = vrcp.f32 %v749_v46  ;;  %v761_v56 = vand.u32 2147483648, %v749_v46  ;;  %vm755_vm3 = vweird.f32 %v749_v46  ;;  %v759_v51 = vand.u32 2147483647, %v749_v46 }
 0x46c   :  { %v762_v41 = vor.u32 1.1754944e-38, %v761_v56  ;;  %vm760_vm5 = vcmp.eq.f32.partialorder %v759_v51, 8.507059e+37 }
 0x470   :  { %v1687_v47 = vpop.eup %1686 }
 0x471   :  { %v751_v42 = vmul.f32 %v1687_v47, %v749_v46  ;;  %vm756_vm15 = vweird.f32 %v1687_v47 }
 0x472   :  { %vm757_vm4 = vmor %vm755_vm3, %vm756_vm15 }
 0x473   :  { %v752_v48 = vsub.f32 1.0, %v751_v42  ;;  %v2317_v42 = vld [vmem:[#allocation6] sm:$0xff] }
 0x474   :  { %994 = vmatpush.msrb.mxu0 %v2317_v42 }
 0x475   :  { %v753_v50 = vmul.f32 %v1687_v47, %v752_v48  ;;  %v2319_v48 = vld [vmem:[#allocation6 + $0x8] sm:$0xff] }
 0x476   :  { %1014 = vmatpush.msrb.mxu1 %v2319_v48 }
 0x477   :  { %v754_v40 = vadd.f32 %v1687_v47, %v753_v50 }
 0x479   :  { %v758_v57 = vsel %vm757_vm4, %v1687_v47, %v754_v40 }
 0x47a   :  { %v763_v52 = vsel %vm760_vm5, %v762_v41, %v758_v57 }
 0x4c1   :  { %v775_v53 = vpop.permute.xlu2 %774 }
 0x4c2   :  { %v777_v58 = vmul.f32 %v775_v53, %v763_v52 }
 0x4c4   :  { %1616 = vmatmul.msk.f32.vlgmr.msra.gmra.mxu0 %vm359_vm1, %v777_v58  ;;  %1617 = vmatmul.msk.f32.vlgmr.msra.gmra.mxu1 %vm359_vm1, %v777_v58 }
 0x4c5   :  { %1618 = vmatmul.msk.f32.vlgmr.msrb.gmra.mxu2 %vm359_vm1, %v777_v58  ;;  %1248 = vmatpush.msra.mxu1 %v2138_v32 }
 0x4c7   :  { %1249 = vmatpush.msra.mxu1 %v2143_v36 }
 0x4c9   :  { %1250 = vmatpush.msra.mxu1 %v2150_v37 }
 0x4cb   :  { %1251 = vmatpush.msra.mxu1 %v2158_v2 }
 0x4cd   :  { %1252 = vmatpush.msra.mxu1 %v2166_v38 }
 0x4cf   :  { %1253 = vmatpush.msra.mxu1 %v2174_v39 }
 0x4d1   :  { %1254 = vmatpush.msra.mxu1 %v2182_v30 }
 0x4d3   :  { %1255 = vmatpush.msra.mxu1 %v2198_v49 }
 0x541   :  { %v798_v59 = vpop.f32.mrf.mxu0  ;;  %v843_v8 = vpop.f32.mrf.mxu1 }
 0x542   :  { %v799_v34 = vadd.f32 %v2248_v11, %v798_v59 }
 0x544   :  { %v802_v60 = vrot.slane %v799_v34, 1  ;;  %v803_v62 = vrot.slane %v799_v34, 2  ;;  %806 = vst.msk [vmem:[#allocation8 + $0x2] sm:$0x1] %vm499_vm2, %v799_v34 }
 0x546   :  { %807 = vst.msk [vmem:[#allocation8 + $0xa] sm:$0x1] %vm499_vm2, %v802_v60 }
 0x547   :  { %808 = vst.msk [vmem:[#allocation8 + $0x12] sm:$0x1] %vm499_vm2, %v803_v62 }
 0x548   :  { %v863_v35 = vpop.f32.mrf.mxu2 }
 0x549   :  { %v868_v7 = vrot.slane %v863_v35, 4 }
 0x54b   :  { %v869_v13 = vsel %vm87_vm0, %v843_v8, %v868_v7 }
 0x54c   :  { %v871_v10 = vadd.f32 %v869_v13, %v2070_v55 }
 0x54e   :  { %895 = vrot.lane.b32.xlu1 %v871_v10, %s1835_s3  ;;  %v1619_v14 = vmul.f32 -1.442695, %v871_v10  ;;  %v892_v18 = vrot.slane %v871_v10, 4 }
 0x550   :  { %1688 = vpow2.f32 %v1619_v14 }
 0x556   :  { %v1689_v15 = vpop.eup %1688 }
 0x557   :  { %v875_v16 = vadd.f32 1.0, %v1689_v15 }
 0x559   :  { %1690 = vrcp.f32 %v875_v16  ;;  %v887_v22 = vand.u32 2147483648, %v875_v16  ;;  %v885_v24 = vand.u32 2147483647, %v875_v16  ;;  %vm881_vm7 = vweird.f32 %v875_v16 }
 0x55a   :  { %1692 = vtanh.f32 %v892_v18 }
 0x55b   :  { %v888_v55 = vor.u32 1.1754944e-38, %v887_v22  ;;  %vm886_vm9 = vcmp.eq.f32.partialorder %v885_v24, 8.507059e+37 }
 0x55f   :  { %v1691_v17 = vpop.eup %1690 }
 0x560   :  { %v877_v19 = vmul.f32 %v1691_v17, %v875_v16  ;;  %vm882_vm6 = vweird.f32 %v1691_v17  ;;  %v1693_v61 = vpop.eup %1692 }
 0x561   :  { %vm883_vm8 = vmor %vm881_vm7, %vm882_vm6 }
 0x562   :  { %v878_v20 = vsub.f32 1.0, %v877_v19 }
 0x564   :  { %v879_v23 = vmul.f32 %v1691_v17, %v878_v20 }
 0x566   :  { %v880_v25 = vadd.f32 %v1691_v17, %v879_v23 }
 0x568   :  { %v884_v63 = vsel %vm883_vm8, %v1691_v17, %v880_v25 }
 0x569   :  { %v889_v3 = vsel %vm886_vm9, %v888_v55, %v884_v63 }
 0x56a   :  { %v919_v0 = vmul.f32 %v1693_v61, %v889_v3  ;;  %v918_v12 = vmul.f32 %v889_v3, %v2285_v26 }
 0x56c   :  { %921 = vrot.lane.b32.xlu0 %v919_v0, %s1835_s3 }
 0x5c0   :  { %v896_v43 = vpop.permute.xlu1 %895 }
 0x5c1   :  { %v897_v45 = vrot.slane %v896_v43, 4  ;;  %v2345_v43 = vld [vmem:[#allocation6 + $0x68] sm:$0xff] }
 0x5c3   :  { %v1620_v31 = vmul.f32 -1.442695, %v897_v45  ;;  %v1126_v45 = vld [vmem:[#allocation6 + $0x50] sm:$0xff] }
 0x5de   :  { %v922_v21 = vpop.permute.xlu0 %921 }
 0x5df   :  { %v2313_v28 = vadd.f32 %v922_v21, %v918_v12  ;;  %v1130_v12 = vld [vmem:[#allocation6 + $0x70] sm:$0xff]  ;;  %v2342_v21 = vld [vmem:[#allocation6 + $0x78] sm:$0xff] }
 0x5e0   :  { %1140 = vmatpush.msra.mxu3 %v1130_v12  ;;  %1160 = vmatpush.msra.mxu0 %v2342_v21 }
 0x5e1   :  { %1694 = vtanh.f32 %v2313_v28  ;;  %1293 = vmatpush.msrb.mxu2 %v1130_v12 }
 0x5e2   :  { %1696 = vpow2.f32 %v1620_v31  ;;  %1161 = vmatpush.msra.mxu0 %v2345_v43  ;;  %v1124_v31 = vld [vmem:[#allocation6 + $0x40] sm:$0xff] }
 0x5e4   :  { %1162 = vmatpush.msra.mxu0 %v2300_v1 }
 0x5e6   :  { %1163 = vmatpush.msra.mxu0 %v2302_v4 }
 0x5e7   :  { %v1695_v33 = vpop.eup %1694 }
 0x5e8   :  { %927 = vrot.lane.b32.xlu2 %v1695_v33, %s1835_s3  ;;  %v1697_v46 = vpop.eup %1696  ;;  %v1128_v33 = vld [vmem:[#allocation6 + $0x60] sm:$0xff] }
 0x5e9   :  { %v902_v47 = vadd.f32 1.0, %v1697_v46  ;;  %1141 = vmatpush.msra.mxu3 %v1128_v33  ;;  %1294 = vmatpush.msrb.mxu2 %v1128_v33  ;;  %v1122_v46 = vld [vmem:[#allocation6 + $0x30] sm:$0xff] }
 0x5eb   :  { %1698 = vrcp.f32 %v902_v47  ;;  %v914_v57 = vand.u32 2147483648, %v902_v47  ;;  %vm908_vm11 = vweird.f32 %v902_v47  ;;  %v912_v41 = vand.u32 2147483647, %v902_v47  ;;  %1142 = vmatpush.msra.mxu3 %v1126_v45  ;;  %1295 = vmatpush.msrb.mxu2 %v1126_v45 }
 0x5ed   :  { %v915_v53 = vor.u32 1.1754944e-38, %v914_v57  ;;  %vm913_vm13 = vcmp.eq.f32.partialorder %v912_v41, 8.507059e+37  ;;  %1143 = vmatpush.msra.mxu3 %v1124_v31  ;;  %1296 = vmatpush.msrb.mxu2 %v1124_v31 }
 0x5ef   :  { %1144 = vmatpush.msra.mxu3 %v1122_v46  ;;  %1297 = vmatpush.msrb.mxu2 %v1122_v46 }
 0x5f1   :  { %v1699_v26 = vpop.eup %1698 }
 0x5f2   :  { %v904_v50 = vmul.f32 %v1699_v26, %v902_v47  ;;  %vm909_vm10 = vweird.f32 %v1699_v26  ;;  %v2349_v47 = vld [vmem:[#allocation6 + $0x38] sm:$0xff] }
 0x5f3   :  { %vm910_vm12 = vmor %vm908_vm11, %vm909_vm10  ;;  %1164 = vmatpush.msra.mxu0 %v2349_v47 }
 0x5f4   :  { %v905_v40 = vsub.f32 1.0, %v904_v50  ;;  %v1118_v50 = vld [vmem:[#allocation6 + $0x10] sm:$0xff] }
 0x5f5   :  { %1165 = vmatpush.msra.mxu0 %v2306_v5 }
 0x5f6   :  { %v906_v56 = vmul.f32 %v1699_v26, %v905_v40 }
 0x5f7   :  { %1166 = vmatpush.msra.mxu0 %v2308_v9 }
 0x5f8   :  { %v907_v51 = vadd.f32 %v1699_v26, %v906_v56 }
 0x5f9   :  { %1167 = vmatpush.msra.mxu0 %v2319_v48 }
 0x5fa   :  { %v911_v52 = vsel %vm910_vm12, %v1699_v26, %v907_v51  ;;  %v1120_v26 = vld [vmem:[#allocation6 + $0x20] sm:$0xff] }
 0x5fb   :  { %v916_v58 = vsel %vm913_vm13, %v915_v53, %v911_v52  ;;  %1145 = vmatpush.msra.mxu3 %v1120_v26  ;;  %1298 = vmatpush.msrb.mxu2 %v1120_v26 }
 0x5fd   :  { %1146 = vmatpush.msra.mxu3 %v1118_v50  ;;  %1299 = vmatpush.msrb.mxu2 %v1118_v50 }
 0x5ff   :  { %1147 = vmatpush.msra.mxu3 %v2317_v42  ;;  %1300 = vmatpush.msrb.mxu2 %v2317_v42 }
 0x642   :  { %v928_v59 = vpop.permute.xlu2 %927 }
 0x643   :  { %v930_v34 = vmul.f32 %v928_v59, %v916_v58 }
 0x645   :  { %1621 = vmatmul.msk.f32.vlgmr.msrb.gmra.mxu3 %vm359_vm1, %v930_v34  ;;  %1622 = vmatmul.msk.f32.vlgmr.msrb.gmra.mxu0 %vm359_vm1, %v930_v34 }
 0x646   :  { %1623 = vmatmul.msk.f32.vlgmr.msrb.gmra.mxu1 %vm359_vm1, %v930_v34  ;;  %1313 = vmatpush.msrb.mxu3 %v2342_v21 }
 0x647   :  { %1446 = vmatpush.msrb.mxu1 %v1130_v12  ;;  %1401 = vmatpush.msrb.mxu0 %v2138_v32 }
 0x648   :  { %1314 = vmatpush.msrb.mxu3 %v2345_v43 }
 0x649   :  { %1447 = vmatpush.msrb.mxu1 %v1128_v33  ;;  %1402 = vmatpush.msrb.mxu0 %v2143_v36 }
 0x64a   :  { %1315 = vmatpush.msrb.mxu3 %v2300_v1 }
 0x64b   :  { %1448 = vmatpush.msrb.mxu1 %v1126_v45  ;;  %1403 = vmatpush.msrb.mxu0 %v2150_v37 }
 0x64c   :  { %1316 = vmatpush.msrb.mxu3 %v2302_v4 }
 0x64d   :  { %1449 = vmatpush.msrb.mxu1 %v1124_v31  ;;  %1404 = vmatpush.msrb.mxu0 %v2158_v2 }
 0x64e   :  { %1317 = vmatpush.msrb.mxu3 %v2349_v47 }
 0x64f   :  { %1450 = vmatpush.msrb.mxu1 %v1122_v46  ;;  %1405 = vmatpush.msrb.mxu0 %v2166_v38 }
 0x650   :  { %1318 = vmatpush.msrb.mxu3 %v2306_v5 }
 0x651   :  { %1451 = vmatpush.msrb.mxu1 %v1120_v26  ;;  %1406 = vmatpush.msrb.mxu0 %v2174_v39 }
 0x652   :  { %1319 = vmatpush.msrb.mxu3 %v2308_v9 }
 0x653   :  { %1452 = vmatpush.msrb.mxu1 %v1118_v50  ;;  %1407 = vmatpush.msrb.mxu0 %v2182_v30 }
 0x654   :  { %1320 = vmatpush.msrb.mxu3 %v2319_v48 }
 0x655   :  { %1453 = vmatpush.msrb.mxu1 %v2317_v42  ;;  %1408 = vmatpush.msrb.mxu0 %v2198_v49 }
 0x6c2   :  { %v996_v35 = vpop.f32.mrf.mxu0 }
 0x6c3   :  { %v1016_v60 = vpop.f32.mrf.mxu1 }
 0x6c4   :  { %v1021_v62 = vrot.slane %v1016_v60, 4 }
 0x6c6   :  { %v1022_v7 = vsel %vm87_vm0, %v996_v35, %v1021_v62 }
 0x6c7   :  { %v1024_v8 = vadd.f32 %v1022_v7, %v2105_v44 }
 0x6c8   :  { %v951_v13 = vpop.f32.mrf.mxu3 }
 0x6c9   :  { %v952_v10 = vadd.f32 %v2248_v11, %v951_v13  ;;  %1048 = vrot.lane.b32.xlu1 %v1024_v8, %s1835_s3  ;;  %v1624_v14 = vmul.f32 -1.442695, %v1024_v8  ;;  %v1045_v44 = vrot.slane %v1024_v8, 4 }
 0x6cb   :  { %v955_v15 = vrot.slane %v952_v10, 1  ;;  %v956_v16 = vrot.slane %v952_v10, 2  ;;  %959 = vst.msk [vmem:[#allocation8 + $0x3] sm:$0x1] %vm499_vm2, %v952_v10  ;;  %1700 = vpow2.f32 %v1624_v14 }
 0x6cd   :  { %960 = vst.msk [vmem:[#allocation8 + $0xb] sm:$0x1] %vm499_vm2, %v955_v15 }
 0x6ce   :  { %961 = vst.msk [vmem:[#allocation8 + $0x13] sm:$0x1] %vm499_vm2, %v956_v16 }
 0x6d1   :  { %v1701_v17 = vpop.eup %1700 }
 0x6d2   :  { %v1028_v18 = vadd.f32 1.0, %v1701_v17 }
 0x6d4   :  { %1702 = vrcp.f32 %v1028_v18  ;;  %v1040_v23 = vand.u32 2147483648, %v1028_v18  ;;  %v1038_v25 = vand.u32 2147483647, %v1028_v18  ;;  %vm1034_vm15 = vweird.f32 %v1028_v18 }
 0x6d5   :  { %1704 = vtanh.f32 %v1045_v44 }
 0x6d6   :  { %v1041_v63 = vor.u32 1.1754944e-38, %v1040_v23  ;;  %vm1039_vm4 = vcmp.eq.f32.partialorder %v1038_v25, 8.507059e+37 }
 0x6da   :  { %v1703_v19 = vpop.eup %1702 }
 0x6db   :  { %v1030_v20 = vmul.f32 %v1703_v19, %v1028_v18  ;;  %vm1035_vm14 = vweird.f32 %v1703_v19  ;;  %v1705_v3 = vpop.eup %1704 }
 0x6dc   :  { %vm1036_vm3 = vmor %vm1034_vm15, %vm1035_vm14 }
 0x6dd   :  { %v1031_v22 = vsub.f32 1.0, %v1030_v20 }
 0x6df   :  { %v1032_v24 = vmul.f32 %v1703_v19, %v1031_v22 }
 0x6e1   :  { %v1033_v55 = vadd.f32 %v1703_v19, %v1032_v24 }
 0x6e3   :  { %v1037_v61 = vsel %vm1036_vm3, %v1703_v19, %v1033_v55 }
 0x6e4   :  { %v1042_v0 = vsel %vm1039_vm4, %v1041_v63, %v1037_v61 }
 0x6e5   :  { %v1072_v6 = vmul.f32 %v1705_v3, %v1042_v0  ;;  %v1071_v40 = vmul.f32 %v1042_v0, %v2313_v28 }
 0x6e7   :  { %1074 = vrot.lane.b32.xlu0 %v1072_v6, %s1835_s3 }
 0x73b   :  { %v1049_v42 = vpop.permute.xlu1 %1048 }
 0x73c   :  { %v1050_v57 = vrot.slane %v1049_v42, 4 }
 0x73e   :  { %v1625_v41 = vmul.f32 -1.442695, %v1050_v57 }
 0x759   :  { %v1075_v56 = vpop.permute.xlu0 %1074 }
 0x75a   :  { %v2367_v51 = vadd.f32 %v1075_v56, %v1071_v40 }
 0x75c   :  { %1706 = vtanh.f32 %v2367_v51 }
 0x75d   :  { %1708 = vpow2.f32 %v1625_v41 }
 0x762   :  { %v1707_v28 = vpop.eup %1706 }
 0x763   :  { %1080 = vrot.lane.b32.xlu2 %v1707_v28, %s1835_s3  ;;  %v1709_v52 = vpop.eup %1708 }
 0x764   :  { %v1055_v53 = vadd.f32 1.0, %v1709_v52 }
 0x766   :  { %1710 = vrcp.f32 %v1055_v53  ;;  %v1067_v35 = vand.u32 2147483648, %v1055_v53  ;;  %vm1061_vm6 = vweird.f32 %v1055_v53  ;;  %v1065_v7 = vand.u32 2147483647, %v1055_v53 }
 0x768   :  { %v1068_v13 = vor.u32 1.1754944e-38, %v1067_v35  ;;  %vm1066_vm8 = vcmp.eq.f32.partialorder %v1065_v7, 8.507059e+37 }
 0x76c   :  { %v1711_v58 = vpop.eup %1710 }
 0x76d   :  { %v1057_v59 = vmul.f32 %v1711_v58, %v1055_v53  ;;  %vm1062_vm5 = vweird.f32 %v1711_v58 }
 0x76e   :  { %vm1063_vm7 = vmor %vm1061_vm6, %vm1062_vm5 }
 0x76f   :  { %v1058_v34 = vsub.f32 1.0, %v1057_v59 }
 0x771   :  { %v1059_v60 = vmul.f32 %v1711_v58, %v1058_v34 }
 0x773   :  { %v1060_v62 = vadd.f32 %v1711_v58, %v1059_v60 }
 0x775   :  { %v1064_v8 = vsel %vm1063_vm7, %v1711_v58, %v1060_v62 }
 0x776   :  { %v1069_v10 = vsel %vm1066_vm8, %v1068_v13, %v1064_v8 }
 0x7bd   :  { %v1081_v14 = vpop.permute.xlu2 %1080 }
 0x7be   :  { %v1083_v15 = vmul.f32 %v1081_v14, %v1069_v10 }
 0x7c0   :  { %1626 = vmatmul.msk.f32.vlgmr.msra.gmra.mxu2 %vm359_vm1, %v1083_v15  ;;  %1627 = vmatmul.msk.f32.vlgmr.msra.gmra.mxu3 %vm359_vm1, %v1083_v15 }
 0x7c1   :  { %1628 = vmatmul.msk.f32.vlgmr.msra.gmra.mxu0 %vm359_vm1, %v1083_v15  ;;  %1466 = vmatpush.msra.mxu2 %v2342_v21 }
 0x7c2   :  { %1554 = vmatpush.msra.mxu3 %v2138_v32 }
 0x7c3   :  { %1467 = vmatpush.msra.mxu2 %v2345_v43 }
 0x7c4   :  { %1555 = vmatpush.msra.mxu3 %v2143_v36 }
 0x7c5   :  { %1468 = vmatpush.msra.mxu2 %v2300_v1 }
 0x7c6   :  { %1556 = vmatpush.msra.mxu3 %v2150_v37 }
 0x7c7   :  { %1469 = vmatpush.msra.mxu2 %v2302_v4 }
 0x7c8   :  { %1557 = vmatpush.msra.mxu3 %v2158_v2 }
 0x7c9   :  { %1470 = vmatpush.msra.mxu2 %v2349_v47 }
 0x7ca   :  { %1558 = vmatpush.msra.mxu3 %v2166_v38 }
 0x7cb   :  { %1471 = vmatpush.msra.mxu2 %v2306_v5 }
 0x7cc   :  { %1559 = vmatpush.msra.mxu3 %v2174_v39 }
 0x7cd   :  { %1472 = vmatpush.msra.mxu2 %v2308_v9 }
 0x7ce   :  { %1560 = vmatpush.msra.mxu3 %v2182_v30 }
 0x7cf   :  { %1473 = vmatpush.msra.mxu2 %v2319_v48 }
 0x7d0   :  { %1561 = vmatpush.msra.mxu3 %v2198_v49 }
 0x83e   :  { %v1169_v32 = vpop.f32.mrf.mxu0 }
 0x83f   :  { %v1174_v36 = vrot.slane %v1169_v32, 4 }
 0x843   :  { %v1104_v37 = vpop.f32.mrf.mxu2  ;;  %v1149_v2 = vpop.f32.mrf.mxu3 }
 0x844   :  { %v1105_v1 = vadd.f32 %v2248_v11, %v1104_v37  ;;  %v1175_v38 = vsel %vm87_vm0, %v1149_v2, %v1174_v36 }
 0x845   :  { %v1177_v4 = vadd.f32 %v1175_v38, %v2118_v54 }
 0x846   :  { %v1108_v5 = vrot.slane %v1105_v1, 1  ;;  %v1109_v39 = vrot.slane %v1105_v1, 2  ;;  %1112 = vst.msk [vmem:[#allocation8 + $0x4] sm:$0x1] %vm499_vm2, %v1105_v1 }
 0x847   :  { %v1629_v9 = vmul.f32 -1.442695, %v1177_v4  ;;  %1201 = vrot.lane.b32.xlu1 %v1177_v4, %s1835_s3  ;;  %v1198_v16 = vrot.slane %v1177_v4, 4 }
 0x848   :  { %1113 = vst.msk [vmem:[#allocation8 + $0xc] sm:$0x1] %vm499_vm2, %v1108_v5 }
 0x849   :  { %1114 = vst.msk [vmem:[#allocation8 + $0x14] sm:$0x1] %vm499_vm2, %v1109_v39  ;;  %1712 = vpow2.f32 %v1629_v9 }
 0x84f   :  { %v1713_v30 = vpop.eup %1712 }
 0x850   :  { %v1181_v49 = vadd.f32 1.0, %v1713_v30 }
 0x852   :  { %1714 = vrcp.f32 %v1181_v49  ;;  %v1193_v54 = vand.u32 2147483648, %v1181_v49  ;;  %v1191_v44 = vand.u32 2147483647, %v1181_v49  ;;  %vm1187_vm10 = vweird.f32 %v1181_v49 }
 0x853   :  { %1716 = vtanh.f32 %v1198_v16 }
 0x854   :  { %v1194_v22 = vor.u32 1.1754944e-38, %v1193_v54  ;;  %vm1192_vm12 = vcmp.eq.f32.partialorder %v1191_v44, 8.507059e+37 }
 0x858   :  { %v1715_v48 = vpop.eup %1714 }
 0x859   :  { %v1183_v17 = vmul.f32 %v1715_v48, %v1181_v49  ;;  %vm1188_vm9 = vweird.f32 %v1715_v48  ;;  %v1717_v24 = vpop.eup %1716 }
 0x85a   :  { %vm1189_vm11 = vmor %vm1187_vm10, %vm1188_vm9 }
 0x85b   :  { %v1184_v18 = vsub.f32 1.0, %v1183_v17 }
 0x85d   :  { %v1185_v19 = vmul.f32 %v1715_v48, %v1184_v18 }
 0x85f   :  { %v1186_v20 = vadd.f32 %v1715_v48, %v1185_v19 }
 0x861   :  { %v1190_v23 = vsel %vm1189_vm11, %v1715_v48, %v1186_v20 }
 0x862   :  { %v1195_v25 = vsel %vm1192_vm12, %v1194_v22, %v1190_v23 }
 0x863   :  { %v1225_v55 = vmul.f32 %v1717_v24, %v1195_v25  ;;  %v1224_v63 = vmul.f32 %v1195_v25, %v2367_v51 }
 0x865   :  { %1227 = vrot.lane.b32.xlu0 %v1225_v55, %s1835_s3 }
 0x8b9   :  { %v1202_v6 = vpop.permute.xlu1 %1201 }
 0x8ba   :  { %v1203_v12 = vrot.slane %v1202_v6, 4 }
 0x8bc   :  { %v1630_v21 = vmul.f32 -1.442695, %v1203_v12  ;;  %v2434_v12 = vld [vmem:[%s2462_s5] ss:$0 sm:$0xff]  ;;  %s1836_s5 = smov [#allocation8]  }
 0x8bd   :  { %s1578_s21 = sshll.u32 %s1836_s5, 4  ;;  %s1579_s21 = int_to_ptr.vmem [resolvable:$true] %s1578_s21 }
 0x8d7   :  { %v1228_v61 = vpop.permute.xlu0 %1227 }
 0x8d8   :  { %v2408_v3 = vadd.f32 %v1228_v61, %v1224_v63 }
 0x8da   :  { %1718 = vtanh.f32 %v2408_v3 }
 0x8db   :  { %1720 = vpow2.f32 %v1630_v21 }
 0x8e0   :  { %v1719_v0 = vpop.eup %1718 }
 0x8e1   :  { %1233 = vrot.lane.b32.xlu2 %v1719_v0, %s1835_s3  ;;  %v1721_v33 = vpop.eup %1720 }
 0x8e2   :  { %v1208_v43 = vadd.f32 1.0, %v1721_v33 }
 0x8e4   :  { %1722 = vrcp.f32 %v1208_v43  ;;  %v1220_v50 = vand.u32 2147483648, %v1208_v43  ;;  %vm1214_vm14 = vweird.f32 %v1208_v43  ;;  %v1218_v40 = vand.u32 2147483647, %v1208_v43 }
 0x8e6   :  { %v1221_v51 = vor.u32 1.1754944e-38, %v1220_v50  ;;  %vm1219_vm3 = vcmp.eq.f32.partialorder %v1218_v40, 8.507059e+37 }
 0x8ea   :  { %v1723_v45 = vpop.eup %1722 }
 0x8eb   :  { %v1210_v31 = vmul.f32 %v1723_v45, %v1208_v43  ;;  %vm1215_vm13 = vweird.f32 %v1723_v45 }
 0x8ec   :  { %vm1216_vm15 = vmor %vm1214_vm14, %vm1215_vm13 }
 0x8ed   :  { %v1211_v46 = vsub.f32 1.0, %v1210_v31 }
 0x8ef   :  { %v1212_v47 = vmul.f32 %v1723_v45, %v1211_v46 }
 0x8f1   :  { %v1213_v26 = vadd.f32 %v1723_v45, %v1212_v47 }
 0x8f3   :  { %v1217_v56 = vsel %vm1216_vm15, %v1723_v45, %v1213_v26 }
 0x8f4   :  { %v1222_v28 = vsel %vm1219_vm3, %v1221_v51, %v1217_v56 }
 0x93b   :  { %v1234_v42 = vpop.permute.xlu2 %1233 }
 0x93c   :  { %v1236_v57 = vmul.f32 %v1234_v42, %v1222_v28 }
 0x93e   :  { %1631 = vmatmul.msk.f32.vlgmr.msra.gmra.mxu1 %vm359_vm1, %v1236_v57  ;;  %1632 = vmatmul.msk.f32.vlgmr.msrb.gmra.mxu2 %vm359_vm1, %v1236_v57 }
 0x93f   :  { %1633 = vmatmul.msk.f32.vlgmr.msrb.gmra.mxu3 %vm359_vm1, %v1236_v57 }
 0x9bb   :  { %v1257_v41 = vpop.f32.mrf.mxu1 }
 0x9bc   :  { %v1258_v52 = vadd.f32 %v2248_v11, %v1257_v41 }
 0x9be   :  { %v1261_v53 = vrot.slane %v1258_v52, 1  ;;  %v1262_v58 = vrot.slane %v1258_v52, 2  ;;  %1265 = vst.msk [vmem:[#allocation8 + $0x5] sm:$0x1] %vm499_vm2, %v1258_v52 }
 0x9c0   :  { %1266 = vst.msk [vmem:[#allocation8 + $0xd] sm:$0x1] %vm499_vm2, %v1261_v53 }
 0x9c1   :  { %1267 = vst.msk [vmem:[#allocation8 + $0x15] sm:$0x1] %vm499_vm2, %v1262_v58  ;;  %v1302_v60 = vpop.f32.mrf.mxu2 }
 0x9c2   :  { %v1322_v59 = vpop.f32.mrf.mxu3 }
 0x9c3   :  { %v1327_v34 = vrot.slane %v1322_v59, 4 }
 0x9c5   :  { %v1328_v62 = vsel %vm87_vm0, %v1302_v60, %v1327_v34 }
 0x9c6   :  { %v1330_v35 = vadd.f32 %v1328_v62, %v2126_v27 }
 0x9c8   :  { %1354 = vrot.lane.b32.xlu1 %v1330_v35, %s1835_s3  ;;  %v1634_v7 = vmul.f32 -1.442695, %v1330_v35  ;;  %v1351_v10 = vrot.slane %v1330_v35, 4 }
 0x9ca   :  { %1724 = vpow2.f32 %v1634_v7 }
 0x9d0   :  { %v1725_v11 = vpop.eup %1724 }
 0x9d1   :  { %v1334_v8 = vadd.f32 1.0, %v1725_v11 }
 0x9d3   :  { %1726 = vrcp.f32 %v1334_v8  ;;  %v1346_v32 = vand.u32 2147483648, %v1334_v8  ;;  %v1344_v37 = vand.u32 2147483647, %v1334_v8  ;;  %vm1340_vm5 = vweird.f32 %v1334_v8 }
 0x9d4   :  { %1728 = vtanh.f32 %v1351_v10 }
 0x9d5   :  { %v1347_v27 = vor.u32 1.1754944e-38, %v1346_v32  ;;  %vm1345_vm7 = vcmp.eq.f32.partialorder %v1344_v37, 8.507059e+37 }
 0x9d9   :  { %v1727_v13 = vpop.eup %1726 }
 0x9da   :  { %v1336_v14 = vmul.f32 %v1727_v13, %v1334_v8  ;;  %vm1341_vm4 = vweird.f32 %v1727_v13  ;;  %v1729_v38 = vpop.eup %1728 }
 0x9db   :  { %vm1342_vm6 = vmor %vm1340_vm5, %vm1341_vm4 }
 0x9dc   :  { %v1337_v15 = vsub.f32 1.0, %v1336_v14 }
 0x9de   :  { %v1338_v36 = vmul.f32 %v1727_v13, %v1337_v15 }
 0x9e0   :  { %v1339_v2 = vadd.f32 %v1727_v13, %v1338_v36 }
 0x9e2   :  { %v1343_v1 = vsel %vm1342_vm6, %v1727_v13, %v1339_v2 }
 0x9e3   :  { %v1348_v4 = vsel %vm1345_vm7, %v1347_v27, %v1343_v1 }
 0x9e4   :  { %v1378_v5 = vmul.f32 %v1729_v38, %v1348_v4  ;;  %v1377_v39 = vmul.f32 %v1348_v4, %v2408_v3 }
 0x9e6   :  { %1380 = vrot.lane.b32.xlu0 %v1378_v5, %s1835_s3 }
 0xa3a   :  { %v1355_v48 = vpop.permute.xlu1 %1354 }
 0xa3b   :  { %v1356_v16 = vrot.slane %v1355_v48, 4 }
 0xa3d   :  { %v1635_v17 = vmul.f32 -1.442695, %v1356_v16 }
 0xa58   :  { %v1381_v9 = vpop.permute.xlu0 %1380 }
 0xa59   :  { %v2424_v30 = vadd.f32 %v1381_v9, %v1377_v39 }
 0xa5b   :  { %1730 = vtanh.f32 %v2424_v30 }
 0xa5c   :  { %1732 = vpow2.f32 %v1635_v17 }
 0xa61   :  { %v1731_v49 = vpop.eup %1730 }
 0xa62   :  { %1386 = vrot.lane.b32.xlu2 %v1731_v49, %s1835_s3  ;;  %v1733_v18 = vpop.eup %1732 }
 0xa63   :  { %v1361_v54 = vadd.f32 1.0, %v1733_v18 }
 0xa65   :  { %1734 = vrcp.f32 %v1361_v54  ;;  %v1373_v24 = vand.u32 2147483648, %v1361_v54  ;;  %vm1367_vm9 = vweird.f32 %v1361_v54  ;;  %v1371_v25 = vand.u32 2147483647, %v1361_v54 }
 0xa67   :  { %v1374_v63 = vor.u32 1.1754944e-38, %v1373_v24  ;;  %vm1372_vm11 = vcmp.eq.f32.partialorder %v1371_v25, 8.507059e+37 }
 0xa6b   :  { %v1735_v19 = vpop.eup %1734 }
 0xa6c   :  { %v1363_v44 = vmul.f32 %v1735_v19, %v1361_v54  ;;  %vm1368_vm8 = vweird.f32 %v1735_v19 }
 0xa6d   :  { %vm1369_vm10 = vmor %vm1367_vm9, %vm1368_vm8 }
 0xa6e   :  { %v1364_v20 = vsub.f32 1.0, %v1363_v44 }
 0xa70   :  { %v1365_v22 = vmul.f32 %v1735_v19, %v1364_v20 }
 0xa72   :  { %v1366_v23 = vadd.f32 %v1735_v19, %v1365_v22 }
 0xa74   :  { %v1370_v55 = vsel %vm1369_vm10, %v1735_v19, %v1366_v23 }
 0xa75   :  { %v1375_v61 = vsel %vm1372_vm11, %v1374_v63, %v1370_v55 }
 0xabc   :  { %v1387_v3 = vpop.permute.xlu2 %1386 }
 0xabd   :  { %v1389_v0 = vmul.f32 %v1387_v3, %v1375_v61 }
 0xabf   :  { %1636 = vmatmul.msk.f32.vlgmr.msrb.gmra.mxu0 %vm359_vm1, %v1389_v0  ;;  %1637 = vmatmul.msk.f32.vlgmr.msrb.gmra.mxu1 %vm359_vm1, %v1389_v0 }
 0xac0   :  { %1638 = vmatmul.msk.f32.vlgmr.msra.gmra.mxu2 %vm359_vm1, %v1389_v0 }
 0xb3c   :  { %v1410_v6 = vpop.f32.mrf.mxu0  ;;  %v1455_v46 = vpop.f32.mrf.mxu1 }
 0xb3d   :  { %v1411_v21 = vadd.f32 %v2434_v12, %v1410_v6 }
 0xb3f   :  { %v1414_v33 = vrot.slane %v1411_v21, 1  ;;  %v1415_v43 = vrot.slane %v1411_v21, 2  ;;  %1418 = vst.msk [vmem:[#allocation8 + $0x6] sm:$0x1] %vm499_vm2, %v1411_v21 }
 0xb41   :  { %1419 = vst.msk [vmem:[#allocation8 + $0xe] sm:$0x1] %vm499_vm2, %v1414_v33 }
 0xb42   :  { %1420 = vst.msk [vmem:[#allocation8 + $0x16] sm:$0x1] %vm499_vm2, %v1415_v43 }
 0xb43   :  { %v1475_v45 = vpop.f32.mrf.mxu2 }
 0xb44   :  { %v1480_v31 = vrot.slane %v1475_v45, 4 }
 0xb46   :  { %v1481_v47 = vsel %vm87_vm0, %v1455_v46, %v1480_v31 }
 0xb47   :  { %v1483_v26 = vadd.f32 %v1481_v47, %v2131_v29 }
 0xb49   :  { %1507 = vrot.lane.b32.xlu1 %v1483_v26, %s1835_s3  ;;  %v1639_v50 = vmul.f32 -1.442695, %v1483_v26  ;;  %v1504_v28 = vrot.slane %v1483_v26, 4 }
 0xb4b   :  { %1736 = vpow2.f32 %v1639_v50 }
 0xb51   :  { %v1737_v40 = vpop.eup %1736 }
 0xb52   :  { %v1487_v56 = vadd.f32 1.0, %v1737_v40 }
 0xb54   :  { %1738 = vrcp.f32 %v1487_v56  ;;  %v1499_v41 = vand.u32 2147483648, %v1487_v56  ;;  %v1497_v53 = vand.u32 2147483647, %v1487_v56  ;;  %vm1493_vm0 = vweird.f32 %v1487_v56 }
 0xb55   :  { %1740 = vtanh.f32 %v1504_v28 }
 0xb56   :  { %v1500_v29 = vor.u32 1.1754944e-38, %v1499_v41  ;;  %vm1498_vm14 = vcmp.eq.f32.partialorder %v1497_v53, 8.507059e+37 }
 0xb5a   :  { %v1739_v51 = vpop.eup %1738 }
 0xb5b   :  { %v1489_v42 = vmul.f32 %v1739_v51, %v1487_v56  ;;  %vm1494_vm12 = vweird.f32 %v1739_v51  ;;  %v1741_v34 = vpop.eup %1740 }
 0xb5c   :  { %vm1495_vm13 = vmor %vm1493_vm0, %vm1494_vm12 }
 0xb5d   :  { %v1490_v57 = vsub.f32 1.0, %v1489_v42 }
 0xb5f   :  { %v1491_v52 = vmul.f32 %v1739_v51, %v1490_v57 }
 0xb61   :  { %v1492_v58 = vadd.f32 %v1739_v51, %v1491_v52 }
 0xb63   :  { %v1496_v59 = vsel %vm1495_vm13, %v1739_v51, %v1492_v58 }
 0xb64   :  { %v1501_v60 = vsel %vm1498_vm14, %v1500_v29, %v1496_v59 }
 0xb65   :  { %v1531_v62 = vmul.f32 %v1741_v34, %v1501_v60  ;;  %v1530_v35 = vmul.f32 %v1501_v60, %v2424_v30 }
 0xb67   :  { %1533 = vrot.lane.b32.xlu0 %v1531_v62, %s1835_s3 }
 0xbbb   :  { %v1508_v13 = vpop.permute.xlu1 %1507 }
 0xbbc   :  { %v1509_v10 = vrot.slane %v1508_v13, 4 }
 0xbbe   :  { %v1640_v14 = vmul.f32 -1.442695, %v1509_v10 }
 0xbd9   :  { %v1534_v7 = vpop.permute.xlu0 %1533 }
 0xbda   :  { %v1536_v11 = vadd.f32 %v1534_v7, %v1530_v35 }
 0xbdc   :  { %1742 = vtanh.f32 %v1536_v11 }
 0xbdd   :  { %1744 = vpow2.f32 %v1640_v14 }
 0xbe2   :  { %v1743_v8 = vpop.eup %1742 }
 0xbe3   :  { %1539 = vrot.lane.b32.xlu2 %v1743_v8, %s1835_s3  ;;  %v1745_v15 = vpop.eup %1744 }
 0xbe4   :  { %v1514_v32 = vadd.f32 1.0, %v1745_v15 }
 0xbe6   :  { %1746 = vrcp.f32 %v1514_v32  ;;  %v1526_v38 = vand.u32 2147483648, %v1514_v32  ;;  %vm1520_vm3 = vweird.f32 %v1514_v32  ;;  %v1524_v4 = vand.u32 2147483647, %v1514_v32 }
 0xbe8   :  { %v1527_v39 = vor.u32 1.1754944e-38, %v1526_v38  ;;  %vm1525_vm5 = vcmp.eq.f32.partialorder %v1524_v4, 8.507059e+37 }
 0xbec   :  { %v1747_v36 = vpop.eup %1746 }
 0xbed   :  { %v1516_v37 = vmul.f32 %v1747_v36, %v1514_v32  ;;  %vm1521_vm15 = vweird.f32 %v1747_v36 }
 0xbee   :  { %vm1522_vm4 = vmor %vm1520_vm3, %vm1521_vm15 }
 0xbef   :  { %v1517_v2 = vsub.f32 1.0, %v1516_v37 }
 0xbf1   :  { %v1518_v27 = vmul.f32 %v1747_v36, %v1517_v2 }
 0xbf3   :  { %v1519_v1 = vadd.f32 %v1747_v36, %v1518_v27 }
 0xbf5   :  { %v1523_v5 = vsel %vm1522_vm4, %v1747_v36, %v1519_v1 }
 0xbf6   :  { %v1528_v9 = vsel %vm1525_vm5, %v1527_v39, %v1523_v5 }
 0xc3d   :  { %v1540_v30 = vpop.permute.xlu2 %1539 }
 0xc3e   :  { %v1542_v49 = vmul.f32 %v1540_v30, %v1528_v9 }
 0xc40   :  { %1641 = vmatmul.msk.f32.vlgmr.msra.gmra.mxu3 %vm359_vm1, %v1542_v49 }
 0xcc3   :  { %v1563_v48 = vpop.f32.mrf.mxu3 }
 0xcc4   :  { %v1564_v16 = vadd.f32 %v2434_v12, %v1563_v48 }
 0xcc6   :  { %v1567_v17 = vrot.slane %v1564_v16, 1  ;;  %v1568_v18 = vrot.slane %v1564_v16, 2  ;;  %1571 = vst.msk [vmem:[#allocation8 + $0x7] sm:$0x1] %vm499_vm2, %v1564_v16 }
 0xcc8   :  { %1572 = vst.msk [vmem:[#allocation8 + $0xf] sm:$0x1] %vm499_vm2, %v1567_v17 }
 0xcc9   :  { %1573 = vst.msk [vmem:[#allocation8 + $0x17] sm:$0x1] %vm499_vm2, %v1568_v18 }
 0xcca   :  { %1586 = dma.vmem_to_hbm [thread:$0]  %s1579_s21, 384, %s1581_s24, [#allocation5], %s1829_s29, %s1829_s29, %s1830_s30  }
 0xccb   :  { %1826 = dma.done.wait [#allocation5], 384  }
 0xccc   :  { %1827 = vsyncadd [#allocation5], 4294966912 }
 0xccd   :  { %1591 = vsyncpa [#allocation4], 1 }
 0xcce   :  { %1592 = vsyncpa [#allocation7], 1 }
 0xccf   :  { %1593 = vsyncpa [#allocation5], 1 }

</bundles_post_ra>
